<compile_context>
chip_gen: v7x
topology: tpu7x:2x2x1
jax: 0.10.0
libtpu: 0.0.40
codegen_flags: <defaults>
</compile_context>

<pallas_src>
import functools

import numpy as np
import jax
import jax.numpy as jnp
from jax.experimental import pallas as pl
from jax.experimental.pallas import tpu as pltpu

EPS = 1e-5


def basic_block_kernel(xr_ref, xid_ref, w1_ref, w2_ref,
                       g1_ref, b1_ref, g2_ref, b2_ref,
                       out_ref, pad_ref, *, cout):
    # xr_ref : (N, H+2, (W+2)*Cin)    f32  zero-padded input, (width, chan) on lanes
    # xid_ref: (N*H, W*Cout)          f32  identity branch, lane-dense
    # w1_ref : (3*(W+2)*Cin,  W*Cout) bf16 banded conv1 weight (see _band_weight)
    # w2_ref : (3*(W+2)*Cout, W*Cout) bf16 banded conv2 weight
    # g*/b*  : (1, W*Cout)            f32  BN gamma/beta pre-tiled across W groups
    # out_ref: (N*H, W*Cout)          f32  lane-dense output
    # pad_ref: (N, H+2, (W+2)*Cout)   f32  scratch: zero-padded bn1/relu activation
    N, Hp, _ = xr_ref.shape
    H = Hp - 2
    WC = out_ref.shape[-1]
    W = WC // cout
    M = N * H * W
    inv_m = 1.0 / M

    def row_patches(t):
        # (N, H+2, L) -> (N*H, 3*L): row (n, h) concatenates the three padded
        # input rows h, h+1, h+2; column order (dy, padded-x, channel) matches
        # the banded weight's row order built in the wrapper.
        return jnp.concatenate([t[:, dy:dy + H, :] for dy in range(3)],
                               axis=-1).reshape(N * H, 3 * t.shape[-1])

    def batchnorm(acc, g_t, b_t):
        # Training-mode BN over all M = N*H*W positions, biased variance, eps.
        # One fused pass for sum / sum-of-squares; channels repeat every
        # `cout` lanes, so the per-channel fold is a wrap-around lane-roll
        # reduction whose result is already broadcast across the W groups.
        stats = jnp.concatenate(
            [jnp.sum(acc, axis=0, keepdims=True),
             jnp.sum(acc * acc, axis=0, keepdims=True)], axis=0)   # (2, W*Cout)
        tot = stats
        for k in range(1, W):
            tot = tot + pltpu.roll(stats, shift=k * cout, axis=1)
        mean = tot[0:1, :] * inv_m
        var = tot[1:2, :] * inv_m - mean * mean
        scale = g_t * jax.lax.rsqrt(var + EPS)
        return acc * scale + (b_t - mean * scale)

    # ---- conv1: ONE (N*H, 3*(W+2)*Cin) x (3*(W+2)*Cin, W*Cout) MXU matmul
    #      (bf16 operands, f32 accumulation), output already lane-dense.
    lhs1 = row_patches(xr_ref[...]).astype(jnp.bfloat16)
    acc1 = jnp.dot(lhs1, w1_ref[...], preferred_element_type=jnp.float32)

    # ---- bn1 + relu (f32, lane-dense)
    y = jnp.maximum(batchnorm(acc1, g1_ref[...], b1_ref[...]), 0.0)

    # ---- zero-pad the activation for conv2 (padding=1): width pad = one
    #      `cout` lane group per side (lane concat), height pad = rows 0 and
    #      H+1 of the pre-zeroed scratch buffer.
    zc = jnp.zeros((N, H, cout), jnp.float32)
    pad_ref[...] = jnp.zeros(pad_ref.shape, pad_ref.dtype)
    pad_ref[:, 1:1 + H, :] = jnp.concatenate([zc, y.reshape(N, H, WC), zc],
                                             axis=-1)

    # ---- conv2: second single MXU matmul
    lhs2 = row_patches(pad_ref[...]).astype(jnp.bfloat16)
    acc2 = jnp.dot(lhs2, w2_ref[...], preferred_element_type=jnp.float32)

    # ---- bn2 + residual add + relu (f32), dense 128-lane stores
    z = batchnorm(acc2, g2_ref[...], b2_ref[...]) + xid_ref[...]
    out_ref[...] = jnp.maximum(z, 0.0)


def _band_weight(w_oihw, width):
    """(Cout, Cin, 3, 3) PyTorch conv weight -> banded matmul weight of shape
    (3*(width+2)*Cin, width*Cout):
        band[(dy, wx, ci), (w, co)] = w[co, ci, dy, wx - w]  if 0 <= wx - w < 3
                                      0                      otherwise
    so that `row_patches(zero_padded_x) @ band` equals the 3x3 "same"
    convolution laid out as (N*H, width*Cout)."""
    cout, cin, kh, kw = w_oihw.shape
    wp = width + kw - 1
    sel = np.zeros((wp, kw, width), np.float32)
    for w in range(width):
        for dx in range(kw):
            sel[w + dx, dx, w] = 1.0
    band = jnp.einsum('oiyx,pxw->ypiwo', w_oihw.astype(jnp.float32),
                      jnp.asarray(sel))
    return band.reshape(kh * wp * cin, width * cout).astype(jnp.bfloat16)


def basic_block(x_nchw, w1, w2, g1, b1, g2, b2):
    """x_nchw: (N, C, H, W); w*: (O, I, 3, 3) PyTorch conv weights; g*/b*: (C,)."""
    N, C, H, W = x_nchw.shape
    Cout = w1.shape[0]
    assert Cout == C, "BasicBlock identity add requires inplanes == outplanes"

    x = jnp.transpose(x_nchw, (0, 2, 3, 1)).astype(jnp.float32)        # NHWC
    xid = x.reshape(N * H, W * C)                                      # lane-dense identity
    xr = jnp.pad(x, ((0, 0), (1, 1), (1, 1), (0, 0))).reshape(N, H + 2, (W + 2) * C)

    w1b = _band_weight(w1, W)                                          # (3*(W+2)*C, W*C)
    w2b = _band_weight(w2, W)

    def tiled(p):  # (C,) -> (1, W*C): per-channel params repeated per W group
        return jnp.tile(p.reshape(1, C).astype(jnp.float32), (1, W))

    out = pl.pallas_call(
        functools.partial(basic_block_kernel, cout=Cout),
        out_shape=jax.ShapeDtypeStruct((N * H, W * Cout), jnp.float32),
        in_specs=[pl.BlockSpec(memory_space=pltpu.MemorySpace.VMEM)] * 8,
        out_specs=pl.BlockSpec(memory_space=pltpu.MemorySpace.VMEM),
        scratch_shapes=[pltpu.VMEM((N, H + 2, (W + 2) * Cout), jnp.float32)],
        compiler_params=pltpu.CompilerParams(vmem_limit_bytes=32 * 1024 * 1024),
    )(xr, xid, w1b, w2b, tiled(g1), tiled(b1), tiled(g2), tiled(b2))

    return jnp.transpose(out.reshape(N, H, W, Cout), (0, 3, 1, 2))     # back to NCHW


def basic_block_reference(x, w1, w2, g1, b1, g2, b2):
    """Pure-JAX f32 reference in NCHW matching the PyTorch forward."""
    def conv(a, w):
        return jax.lax.conv_general_dilated(
            a, w, window_strides=(1, 1), padding=((1, 1), (1, 1)),
            dimension_numbers=('NCHW', 'OIHW', 'NCHW'))

    def bn(a, g, b):
        mean = jnp.mean(a, axis=(0, 2, 3), keepdims=True)
        var = jnp.mean((a - mean) ** 2, axis=(0, 2, 3), keepdims=True)
        return ((a - mean) * jax.lax.rsqrt(var + EPS)
                * g.reshape(1, -1, 1, 1) + b.reshape(1, -1, 1, 1))

    out = jnp.maximum(bn(conv(x, w1), g1, b1), 0.0)
    out = bn(conv(out, w2), g2, b2) + x
    return jnp.maximum(out, 0.0)


if __name__ == "__main__":
    N, C, H, W = 2, 8, 16, 16  # inplanes == outplanes == 8; W*C = 128 (lane-dense)
    key = jax.random.PRNGKey(0)
    kx, k1, k2, kg1, kb1, kg2, kb2 = jax.random.split(key, 7)

    x = jax.random.normal(kx, (N, C, H, W), jnp.float32)
    w1 = 0.1 * jax.random.normal(k1, (C, C, 3, 3), jnp.float32)   # conv1 weight (O,I,3,3)
    w2 = 0.1 * jax.random.normal(k2, (C, C, 3, 3), jnp.float32)   # conv2 weight
    g1 = 1.0 + 0.1 * jax.random.normal(kg1, (C,), jnp.float32)    # bn1 gamma
    b1 = 0.1 * jax.random.normal(kb1, (C,), jnp.float32)          # bn1 beta
    g2 = 1.0 + 0.1 * jax.random.normal(kg2, (C,), jnp.float32)    # bn2 gamma
    b2 = 0.1 * jax.random.normal(kb2, (C,), jnp.float32)          # bn2 beta

    out = jax.block_until_ready(basic_block(x, w1, w2, g1, b1, g2, b2))
    ref = jax.block_until_ready(basic_block_reference(x, w1, w2, g1, b1, g2, b2))

    assert out.shape == (N, C, H, W)
    # The kernel feeds the MXU bf16 operands (f32 accumulation), so compare
    # against the pure-f32 reference with a bf16-appropriate tolerance.
    assert jnp.allclose(out, ref, atol=5e-2, rtol=5e-2), \
        f"max abs err = {jnp.max(jnp.abs(out - ref))}"
    print("KERNEL_OK")
</pallas_src>

<mosaic_0001>
module attributes {stable_mosaic.version = 11 : i64} {
  func.func @basic_block_kernel(%arg0: memref<2x18x144xf32, #tpu.memory_space<vmem>>, %arg1: memref<32x128xf32, #tpu.memory_space<vmem>>, %arg2: memref<432x128xbf16, #tpu.memory_space<vmem>>, %arg3: memref<432x128xbf16, #tpu.memory_space<vmem>>, %arg4: memref<1x128xf32, #tpu.memory_space<vmem>>, %arg5: memref<1x128xf32, #tpu.memory_space<vmem>>, %arg6: memref<1x128xf32, #tpu.memory_space<vmem>>, %arg7: memref<1x128xf32, #tpu.memory_space<vmem>>, %arg8: memref<32x128xf32, #tpu.memory_space<vmem>>, %arg9: memref<2x18x144xf32, #tpu.memory_space<vmem>>) attributes {dimension_semantics = [], scalar_prefetch = 0 : i64, scratch_operands = 1 : i64, tpu.core_type = #tpu.core_type<tc>} {
    %c0 = arith.constant 0 : index
    %c0_0 = arith.constant 0 : index
    %c0_1 = arith.constant 0 : index
    %0 = vector.load %arg0[%c0, %c0_0, %c0_1] : memref<2x18x144xf32, #tpu.memory_space<vmem>>, vector<2x18x144xf32>
    %1 = vector.extract_strided_slice %0 {offsets = [0, 0, 0], sizes = [2, 16, 144], strides = [1, 1, 1]} : vector<2x18x144xf32> to vector<2x16x144xf32>
    %2 = vector.extract_strided_slice %0 {offsets = [0, 1, 0], sizes = [2, 16, 144], strides = [1, 1, 1]} : vector<2x18x144xf32> to vector<2x16x144xf32>
    %3 = vector.extract_strided_slice %0 {offsets = [0, 2, 0], sizes = [2, 16, 144], strides = [1, 1, 1]} : vector<2x18x144xf32> to vector<2x16x144xf32>
    %4 = tpu.concatenate %1, %2, %3 in 2 : vector<2x16x144xf32>, vector<2x16x144xf32>, vector<2x16x144xf32> -> vector<2x16x432xf32>
    %5 = vector.shape_cast %4 : vector<2x16x432xf32> to vector<32x432xf32>
    %6 = arith.truncf %5 : vector<32x432xf32> to vector<32x432xbf16>
    %c0_2 = arith.constant 0 : index
    %c0_3 = arith.constant 0 : index
    %7 = vector.load %arg2[%c0_2, %c0_3] : memref<432x128xbf16, #tpu.memory_space<vmem>>, vector<432x128xbf16>
    %cst = arith.constant dense<0.000000e+00> : vector<32x128xf32>
    %8 = tpu.matmul %6, %7, %cst {dimension_numbers = #tpu.dot_dimension_numbers<[1], [0], [0], [1], [0, 0, 1, 1], [], []>} : vector<32x432xbf16>, vector<432x128xbf16>, vector<32x128xf32> -> vector<32x128xf32>
    %c0_4 = arith.constant 0 : index
    %c0_5 = arith.constant 0 : index
    %9 = vector.load %arg4[%c0_4, %c0_5] : memref<1x128xf32, #tpu.memory_space<vmem>>, vector<1x128xf32>
    %c0_6 = arith.constant 0 : index
    %c0_7 = arith.constant 0 : index
    %10 = vector.load %arg5[%c0_6, %c0_7] : memref<1x128xf32, #tpu.memory_space<vmem>>, vector<1x128xf32>
    %cst_8 = arith.constant dense<0.000000e+00> : vector<128xf32>
    %11 = vector.multi_reduction <add>, %8, %cst_8 [0] : vector<32x128xf32> to vector<128xf32>
    %12 = vector.shape_cast %11 : vector<128xf32> to vector<1x128xf32>
    %13 = arith.mulf %8, %8 : vector<32x128xf32>
    %cst_9 = arith.constant dense<0.000000e+00> : vector<128xf32>
    %14 = vector.multi_reduction <add>, %13, %cst_9 [0] : vector<32x128xf32> to vector<128xf32>
    %15 = vector.shape_cast %14 : vector<128xf32> to vector<1x128xf32>
    %16 = tpu.concatenate %12, %15 in 0 : vector<1x128xf32>, vector<1x128xf32> -> vector<2x128xf32>
    %c8_i32 = arith.constant 8 : i32
    %17 = tpu.dynamic_rotate %16 by %c8_i32 dim 1 : vector<2x128xf32>, i32 -> vector<2x128xf32>
    %18 = arith.addf %16, %17 : vector<2x128xf32>
    %c16_i32 = arith.constant 16 : i32
    %19 = tpu.dynamic_rotate %16 by %c16_i32 dim 1 : vector<2x128xf32>, i32 -> vector<2x128xf32>
    %20 = arith.addf %18, %19 : vector<2x128xf32>
    %c24_i32 = arith.constant 24 : i32
    %21 = tpu.dynamic_rotate %16 by %c24_i32 dim 1 : vector<2x128xf32>, i32 -> vector<2x128xf32>
    %22 = arith.addf %20, %21 : vector<2x128xf32>
    %c32_i32 = arith.constant 32 : i32
    %23 = tpu.dynamic_rotate %16 by %c32_i32 dim 1 : vector<2x128xf32>, i32 -> vector<2x128xf32>
    %24 = arith.addf %22, %23 : vector<2x128xf32>
    %c40_i32 = arith.constant 40 : i32
    %25 = tpu.dynamic_rotate %16 by %c40_i32 dim 1 : vector<2x128xf32>, i32 -> vector<2x128xf32>
    %26 = arith.addf %24, %25 : vector<2x128xf32>
    %c48_i32 = arith.constant 48 : i32
    %27 = tpu.dynamic_rotate %16 by %c48_i32 dim 1 : vector<2x128xf32>, i32 -> vector<2x128xf32>
    %28 = arith.addf %26, %27 : vector<2x128xf32>
    %c56_i32 = arith.constant 56 : i32
    %29 = tpu.dynamic_rotate %16 by %c56_i32 dim 1 : vector<2x128xf32>, i32 -> vector<2x128xf32>
    %30 = arith.addf %28, %29 : vector<2x128xf32>
    %c64_i32 = arith.constant 64 : i32
    %31 = tpu.dynamic_rotate %16 by %c64_i32 dim 1 : vector<2x128xf32>, i32 -> vector<2x128xf32>
    %32 = arith.addf %30, %31 : vector<2x128xf32>
    %c72_i32 = arith.constant 72 : i32
    %33 = tpu.dynamic_rotate %16 by %c72_i32 dim 1 : vector<2x128xf32>, i32 -> vector<2x128xf32>
    %34 = arith.addf %32, %33 : vector<2x128xf32>
    %c80_i32 = arith.constant 80 : i32
    %35 = tpu.dynamic_rotate %16 by %c80_i32 dim 1 : vector<2x128xf32>, i32 -> vector<2x128xf32>
    %36 = arith.addf %34, %35 : vector<2x128xf32>
    %c88_i32 = arith.constant 88 : i32
    %37 = tpu.dynamic_rotate %16 by %c88_i32 dim 1 : vector<2x128xf32>, i32 -> vector<2x128xf32>
    %38 = arith.addf %36, %37 : vector<2x128xf32>
    %c96_i32 = arith.constant 96 : i32
    %39 = tpu.dynamic_rotate %16 by %c96_i32 dim 1 : vector<2x128xf32>, i32 -> vector<2x128xf32>
    %40 = arith.addf %38, %39 : vector<2x128xf32>
    %c104_i32 = arith.constant 104 : i32
    %41 = tpu.dynamic_rotate %16 by %c104_i32 dim 1 : vector<2x128xf32>, i32 -> vector<2x128xf32>
    %42 = arith.addf %40, %41 : vector<2x128xf32>
    %c112_i32 = arith.constant 112 : i32
    %43 = tpu.dynamic_rotate %16 by %c112_i32 dim 1 : vector<2x128xf32>, i32 -> vector<2x128xf32>
    %44 = arith.addf %42, %43 : vector<2x128xf32>
    %c120_i32 = arith.constant 120 : i32
    %45 = tpu.dynamic_rotate %16 by %c120_i32 dim 1 : vector<2x128xf32>, i32 -> vector<2x128xf32>
    %46 = arith.addf %44, %45 : vector<2x128xf32>
    %47 = vector.extract_strided_slice %46 {offsets = [0, 0], sizes = [1, 128], strides = [1, 1]} : vector<2x128xf32> to vector<1x128xf32>
    %cst_10 = arith.constant 0.001953125 : f32
    %48 = vector.broadcast %cst_10 : f32 to vector<1x128xf32>
    %49 = arith.mulf %47, %48 : vector<1x128xf32>
    %50 = vector.extract_strided_slice %46 {offsets = [1, 0], sizes = [1, 128], strides = [1, 1]} : vector<2x128xf32> to vector<1x128xf32>
    %cst_11 = arith.constant 0.001953125 : f32
    %51 = vector.broadcast %cst_11 : f32 to vector<1x128xf32>
    %52 = arith.mulf %50, %51 : vector<1x128xf32>
    %53 = arith.mulf %49, %49 : vector<1x128xf32>
    %54 = arith.subf %52, %53 : vector<1x128xf32>
    %cst_12 = arith.constant 9.99999974E-6 : f32
    %55 = vector.broadcast %cst_12 : f32 to vector<1x128xf32>
    %56 = arith.addf %54, %55 : vector<1x128xf32>
    %57 = math.rsqrt %56 : vector<1x128xf32>
    %58 = arith.mulf %9, %57 : vector<1x128xf32>
    %59 = vector.broadcast %58 : vector<1x128xf32> to vector<32x128xf32>
    %60 = arith.mulf %8, %59 : vector<32x128xf32>
    %61 = arith.mulf %49, %58 : vector<1x128xf32>
    %62 = arith.subf %10, %61 : vector<1x128xf32>
    %63 = vector.broadcast %62 : vector<1x128xf32> to vector<32x128xf32>
    %64 = arith.addf %60, %63 : vector<32x128xf32>
    %cst_13 = arith.constant 0.000000e+00 : f32
    %65 = vector.broadcast %cst_13 : f32 to vector<32x128xf32>
    %66 = arith.maximumf %64, %65 : vector<32x128xf32>
    %cst_14 = arith.constant 0.000000e+00 : f32
    %67 = vector.broadcast %cst_14 : f32 to vector<2x16x8xf32>
    %cst_15 = arith.constant 0.000000e+00 : f32
    %68 = vector.broadcast %cst_15 : f32 to vector<2x18x144xf32>
    %c0_16 = arith.constant 0 : index
    %c0_17 = arith.constant 0 : index
    %c0_18 = arith.constant 0 : index
    %69 = vector.load %arg9[%c0_16, %c0_17, %c0_18] : memref<2x18x144xf32, #tpu.memory_space<vmem>>, vector<2x18x144xf32>
    tpu.vector_store %arg9[%c0_16, %c0_17, %c0_18], %68 {strides = array<i32>} : memref<2x18x144xf32, #tpu.memory_space<vmem>>, vector<2x18x144xf32>,
    %70 = vector.shape_cast %66 : vector<32x128xf32> to vector<2x16x128xf32>
    %71 = tpu.concatenate %67, %70, %67 in 2 : vector<2x16x8xf32>, vector<2x16x128xf32>, vector<2x16x8xf32> -> vector<2x16x144xf32>
    %c0_19 = arith.constant 0 : index
    %c1 = arith.constant 1 : index
    %c0_20 = arith.constant 0 : index
    %72 = vector.load %arg9[%c0_19, %c1, %c0_20] : memref<2x18x144xf32, #tpu.memory_space<vmem>>, vector<2x16x144xf32>
    tpu.vector_store %arg9[%c0_19, %c1, %c0_20], %71 {strides = array<i32>} : memref<2x18x144xf32, #tpu.memory_space<vmem>>, vector<2x16x144xf32>,
    %c0_21 = arith.constant 0 : index
    %c0_22 = arith.constant 0 : index
    %c0_23 = arith.constant 0 : index
    %73 = vector.load %arg9[%c0_21, %c0_22, %c0_23] : memref<2x18x144xf32, #tpu.memory_space<vmem>>, vector<2x18x144xf32>
    %74 = vector.extract_strided_slice %73 {offsets = [0, 0, 0], sizes = [2, 16, 144], strides = [1, 1, 1]} : vector<2x18x144xf32> to vector<2x16x144xf32>
    %75 = vector.extract_strided_slice %73 {offsets = [0, 1, 0], sizes = [2, 16, 144], strides = [1, 1, 1]} : vector<2x18x144xf32> to vector<2x16x144xf32>
    %76 = vector.extract_strided_slice %73 {offsets = [0, 2, 0], sizes = [2, 16, 144], strides = [1, 1, 1]} : vector<2x18x144xf32> to vector<2x16x144xf32>
    %77 = tpu.concatenate %74, %75, %76 in 2 : vector<2x16x144xf32>, vector<2x16x144xf32>, vector<2x16x144xf32> -> vector<2x16x432xf32>
    %78 = vector.shape_cast %77 : vector<2x16x432xf32> to vector<32x432xf32>
    %79 = arith.truncf %78 : vector<32x432xf32> to vector<32x432xbf16>
    %c0_24 = arith.constant 0 : index
    %c0_25 = arith.constant 0 : index
    %80 = vector.load %arg3[%c0_24, %c0_25] : memref<432x128xbf16, #tpu.memory_space<vmem>>, vector<432x128xbf16>
    %cst_26 = arith.constant dense<0.000000e+00> : vector<32x128xf32>
    %81 = tpu.matmul %79, %80, %cst_26 {dimension_numbers = #tpu.dot_dimension_numbers<[1], [0], [0], [1], [0, 0, 1, 1], [], []>} : vector<32x432xbf16>, vector<432x128xbf16>, vector<32x128xf32> -> vector<32x128xf32>
    %c0_27 = arith.constant 0 : index
    %c0_28 = arith.constant 0 : index
    %82 = vector.load %arg6[%c0_27, %c0_28] : memref<1x128xf32, #tpu.memory_space<vmem>>, vector<1x128xf32>
    %c0_29 = arith.constant 0 : index
    %c0_30 = arith.constant 0 : index
    %83 = vector.load %arg7[%c0_29, %c0_30] : memref<1x128xf32, #tpu.memory_space<vmem>>, vector<1x128xf32>
    %cst_31 = arith.constant dense<0.000000e+00> : vector<128xf32>
    %84 = vector.multi_reduction <add>, %81, %cst_31 [0] : vector<32x128xf32> to vector<128xf32>
    %85 = vector.shape_cast %84 : vector<128xf32> to vector<1x128xf32>
    %86 = arith.mulf %81, %81 : vector<32x128xf32>
    %cst_32 = arith.constant dense<0.000000e+00> : vector<128xf32>
    %87 = vector.multi_reduction <add>, %86, %cst_32 [0] : vector<32x128xf32> to vector<128xf32>
    %88 = vector.shape_cast %87 : vector<128xf32> to vector<1x128xf32>
    %89 = tpu.concatenate %85, %88 in 0 : vector<1x128xf32>, vector<1x128xf32> -> vector<2x128xf32>
    %c8_i32_33 = arith.constant 8 : i32
    %90 = tpu.dynamic_rotate %89 by %c8_i32_33 dim 1 : vector<2x128xf32>, i32 -> vector<2x128xf32>
    %91 = arith.addf %89, %90 : vector<2x128xf32>
    %c16_i32_34 = arith.constant 16 : i32
    %92 = tpu.dynamic_rotate %89 by %c16_i32_34 dim 1 : vector<2x128xf32>, i32 -> vector<2x128xf32>
    %93 = arith.addf %91, %92 : vector<2x128xf32>
    %c24_i32_35 = arith.constant 24 : i32
    %94 = tpu.dynamic_rotate %89 by %c24_i32_35 dim 1 : vector<2x128xf32>, i32 -> vector<2x128xf32>
    %95 = arith.addf %93, %94 : vector<2x128xf32>
    %c32_i32_36 = arith.constant 32 : i32
    %96 = tpu.dynamic_rotate %89 by %c32_i32_36 dim 1 : vector<2x128xf32>, i32 -> vector<2x128xf32>
    %97 = arith.addf %95, %96 : vector<2x128xf32>
    %c40_i32_37 = arith.constant 40 : i32
    %98 = tpu.dynamic_rotate %89 by %c40_i32_37 dim 1 : vector<2x128xf32>, i32 -> vector<2x128xf32>
    %99 = arith.addf %97, %98 : vector<2x128xf32>
    %c48_i32_38 = arith.constant 48 : i32
    %100 = tpu.dynamic_rotate %89 by %c48_i32_38 dim 1 : vector<2x128xf32>, i32 -> vector<2x128xf32>
    %101 = arith.addf %99, %100 : vector<2x128xf32>
    %c56_i32_39 = arith.constant 56 : i32
    %102 = tpu.dynamic_rotate %89 by %c56_i32_39 dim 1 : vector<2x128xf32>, i32 -> vector<2x128xf32>
    %103 = arith.addf %101, %102 : vector<2x128xf32>
    %c64_i32_40 = arith.constant 64 : i32
    %104 = tpu.dynamic_rotate %89 by %c64_i32_40 dim 1 : vector<2x128xf32>, i32 -> vector<2x128xf32>
    %105 = arith.addf %103, %104 : vector<2x128xf32>
    %c72_i32_41 = arith.constant 72 : i32
    %106 = tpu.dynamic_rotate %89 by %c72_i32_41 dim 1 : vector<2x128xf32>, i32 -> vector<2x128xf32>
    %107 = arith.addf %105, %106 : vector<2x128xf32>
    %c80_i32_42 = arith.constant 80 : i32
    %108 = tpu.dynamic_rotate %89 by %c80_i32_42 dim 1 : vector<2x128xf32>, i32 -> vector<2x128xf32>
    %109 = arith.addf %107, %108 : vector<2x128xf32>
    %c88_i32_43 = arith.constant 88 : i32
    %110 = tpu.dynamic_rotate %89 by %c88_i32_43 dim 1 : vector<2x128xf32>, i32 -> vector<2x128xf32>
    %111 = arith.addf %109, %110 : vector<2x128xf32>
    %c96_i32_44 = arith.constant 96 : i32
    %112 = tpu.dynamic_rotate %89 by %c96_i32_44 dim 1 : vector<2x128xf32>, i32 -> vector<2x128xf32>
    %113 = arith.addf %111, %112 : vector<2x128xf32>
    %c104_i32_45 = arith.constant 104 : i32
    %114 = tpu.dynamic_rotate %89 by %c104_i32_45 dim 1 : vector<2x128xf32>, i32 -> vector<2x128xf32>
    %115 = arith.addf %113, %114 : vector<2x128xf32>
    %c112_i32_46 = arith.constant 112 : i32
    %116 = tpu.dynamic_rotate %89 by %c112_i32_46 dim 1 : vector<2x128xf32>, i32 -> vector<2x128xf32>
    %117 = arith.addf %115, %116 : vector<2x128xf32>
    %c120_i32_47 = arith.constant 120 : i32
    %118 = tpu.dynamic_rotate %89 by %c120_i32_47 dim 1 : vector<2x128xf32>, i32 -> vector<2x128xf32>
    %119 = arith.addf %117, %118 : vector<2x128xf32>
    %120 = vector.extract_strided_slice %119 {offsets = [0, 0], sizes = [1, 128], strides = [1, 1]} : vector<2x128xf32> to vector<1x128xf32>
    %cst_48 = arith.constant 0.001953125 : f32
    %121 = vector.broadcast %cst_48 : f32 to vector<1x128xf32>
    %122 = arith.mulf %120, %121 : vector<1x128xf32>
    %123 = vector.extract_strided_slice %119 {offsets = [1, 0], sizes = [1, 128], strides = [1, 1]} : vector<2x128xf32> to vector<1x128xf32>
    %cst_49 = arith.constant 0.001953125 : f32
    %124 = vector.broadcast %cst_49 : f32 to vector<1x128xf32>
    %125 = arith.mulf %123, %124 : vector<1x128xf32>
    %126 = arith.mulf %122, %122 : vector<1x128xf32>
    %127 = arith.subf %125, %126 : vector<1x128xf32>
    %cst_50 = arith.constant 9.99999974E-6 : f32
    %128 = vector.broadcast %cst_50 : f32 to vector<1x128xf32>
    %129 = arith.addf %127, %128 : vector<1x128xf32>
    %130 = math.rsqrt %129 : vector<1x128xf32>
    %131 = arith.mulf %82, %130 : vector<1x128xf32>
    %132 = vector.broadcast %131 : vector<1x128xf32> to vector<32x128xf32>
    %133 = arith.mulf %81, %132 : vector<32x128xf32>
    %134 = arith.mulf %122, %131 : vector<1x128xf32>
    %135 = arith.subf %83, %134 : vector<1x128xf32>
    %136 = vector.broadcast %135 : vector<1x128xf32> to vector<32x128xf32>
    %137 = arith.addf %133, %136 : vector<32x128xf32>
    %c0_51 = arith.constant 0 : index
    %c0_52 = arith.constant 0 : index
    %138 = vector.load %arg1[%c0_51, %c0_52] : memref<32x128xf32, #tpu.memory_space<vmem>>, vector<32x128xf32>
    %139 = arith.addf %137, %138 : vector<32x128xf32>
    %cst_53 = arith.constant 0.000000e+00 : f32
    %140 = vector.broadcast %cst_53 : f32 to vector<32x128xf32>
    %141 = arith.maximumf %139, %140 : vector<32x128xf32>
    %c0_54 = arith.constant 0 : index
    %c0_55 = arith.constant 0 : index
    %142 = vector.load %arg8[%c0_54, %c0_55] : memref<32x128xf32, #tpu.memory_space<vmem>>, vector<32x128xf32>
    tpu.vector_store %arg8[%c0_54, %c0_55], %141 {strides = array<i32>} : memref<32x128xf32, #tpu.memory_space<vmem>>, vector<32x128xf32>,
    return
  }
}

</mosaic_0001>

<bundles_post_ra>
// kernel: tpu_custom_call.1
= control target key start
LH: loop header
LB: loop body
LE: loop exit
PB: predicated region body
PF: predicated region fallthrough
CT: control target
= control target key end

     0   :  { %13 = vsyncpa [#allocation4], 0  ;;  %s2164_s0 = inlined_call_operand.vmem [shape: f32[2,18,144], index: 0, kind: input, shape index: {}]   ;;  %s2165_s1 = inlined_call_operand.vmem [shape: f32[32,128], index: 1, kind: input, shape index: {}]   ;;  %s2166_s2 = inlined_call_operand.hbm [shape: bf16[432,128], index: 2, kind: input, shape index: {}]   ;;  %s2167_s3 = inlined_call_operand.hbm [shape: bf16[432,128], index: 3, kind: input, shape index: {}]   ;;  %s2168_s4 = inlined_call_operand.vmem [shape: f32[1,128], index: 4, kind: input, shape index: {}]   ;;  %s2169_s5 = inlined_call_operand.vmem [shape: f32[1,128], index: 5, kind: input, shape index: {}]   ;;  %s2170_s6 = inlined_call_operand.vmem [shape: f32[1,128], index: 6, kind: input, shape index: {}]   ;;  %s2171_s7 = inlined_call_operand.vmem [shape: f32[1,128], index: 7, kind: input, shape index: {}]   ;;  %s2172_s8 = inlined_call_operand.hbm [shape: f32[32,128], index: 8, kind: output, shape index: {}]  }
   0x1   :  { %14 = vsyncpa [#allocation7], 0 }
   0x2   :  { %15 = vsyncpa [#allocation5], 0  ;;  %s1682_s27 = smov [#allocation3]   ;;  %s1610_s9 = scalar_lea.hbm %s2166_s2, 3456 }
   0x3   :  { %s25_s28 = sshll.u32 %s1682_s27, 4  ;;  %p1611_p0 = scmp.ne.s32.totalorder %s2166_s2, %s1610_s9  ;;  %s26_s28 = int_to_ptr.vmem [resolvable:$true] %s25_s28 }
   0x4   :  { %p1614_p1 = scmp.lt.u32.totalorder %s1610_s9, %s2166_s2 }
   0x6   :  { %p1616_p2 = pnand %p1614_p1, %p1611_p0 }
   0x8   :  { %1619 = shalt.err (!%p1616_p2)
}
   0x9   :  { %s1620_s14 = scalar_lea.vmem %s26_s28, 3456  ;;  %p1625_p4 = scmp.lt.s32.totalorder %s26_s28, %s26_s28 }
   0xa   :  { %p1621_p3 = scmp.ne.s32.totalorder %s26_s28, %s1620_s14  ;;  %p1626_p5 = scmp.lt.s32.totalorder %s1620_s14, %s1620_s14 }
   0xc   :  { %p1627_p6 = por %p1626_p5, %p1625_p4 }
   0xe   :  { %p1628_p7 = pnand %p1627_p6, %p1621_p3 }
  0x10   :  { %1631 = shalt.err (!%p1628_p7)
}
  0x11   :  { %s1683_s15 = smov 64   ;;  %s1684_s16 = smov 4  }
  0x12   :  { %31 = dma.hbm_to_vmem [thread:$0]  %s2166_s2, 3456, %s26_s28, [#allocation4], %s1683_s15, %s1683_s15, %s1684_s16  }
  0x13   :  { %s1685_s19 = smov [#allocation6]   ;;  %s1632_s23 = scalar_lea.hbm %s2167_s3, 3456 }
  0x14   :  { %s37_s20 = sshll.u32 %s1685_s19, 4  ;;  %p1633_p8 = scmp.ne.s32.totalorder %s2167_s3, %s1632_s23  ;;  %s38_s20 = int_to_ptr.vmem [resolvable:$true] %s37_s20 }
  0x15   :  { %p1636_p9 = scmp.lt.u32.totalorder %s1632_s23, %s2167_s3 }
  0x17   :  { %p1638_p10 = pnand %p1636_p9, %p1633_p8 }
  0x19   :  { %1641 = shalt.err (!%p1638_p10)
}
  0x1a   :  { %s1642_s29 = scalar_lea.vmem %s38_s20, 3456  ;;  %p1647_p12 = scmp.lt.s32.totalorder %s38_s20, %s38_s20 }
  0x1b   :  { %p1643_p11 = scmp.ne.s32.totalorder %s38_s20, %s1642_s29  ;;  %p1648_p13 = scmp.lt.s32.totalorder %s1642_s29, %s1642_s29 }
  0x1d   :  { %p1649_p0 = por %p1648_p13, %p1647_p12 }
  0x1f   :  { %p1650_p1 = pnand %p1649_p0, %p1643_p11 }
  0x21   :  { %1653 = shalt.err (!%p1650_p1)
}
  0x22   :  { %43 = dma.hbm_to_vmem [thread:$0]  %s2167_s3, 3456, %s38_s20, [#allocation7], %s1683_s15, %s1683_s15, %s1684_s16  }
  0x23   :  { %1676 = dma.done.wait [#allocation4], 3456  }
  0x24   :  { %1677 = vsyncadd [#allocation4], 4294963840 }
  0x25   :  { %1678 = dma.done.wait [#allocation7], 3456  }
  0x26   :  { %1679 = vsyncadd [#allocation7], 4294963840  ;;  %v1686_v0 = vmov 0   ;;  %vm133_vm0 = vcmask 1045504   ;;  %v1782_v1 = vld [vmem:[%s2164_s0] sm:$0xff]  ;;  %v1787_v2 = vld [vmem:[%s2164_s0 + $0x8] sm:$0xff] }
  0x27   :  { %471 = vmatprep.subr.bf16.mxu1 %v1686_v0  ;;  %v1792_v3 = vld [vmem:[%s2164_s0 + $0x10] sm:$0xff]  ;;  %vm83_vm1 = vcmask 1046528   ;;  %v1797_v4 = vld [vmem:[%s2164_s0 + $0x18] sm:$0xff]  ;;  %v134_v5 = vrot.slane %v1782_v1, 2  ;;  %v137_v7 = vrot.slane %v1787_v2, 2  ;;  %v84_v11 = vrot.slane %v1782_v1, 1 }
  0x28   :  { %v135_v6 = vrot.slane %v1792_v3, 2  ;;  %v63_v8 = vld [vmem:[%s2164_s0 + $0x20] sm:$0x3]  ;;  %v191_v9 = vpack.c.bf16 %v1792_v3, %v1782_v1  ;;  %v138_v10 = vrot.slane %v1797_v4, 2  ;;  %v85_v12 = vrot.slane %v1792_v3, 1  ;;  %v1818_v19 = vld [vmem:[%s2164_s0 + $0x38] sm:$0xff] }
  0x29   :  { %v90_v13 = vrot.slane %v63_v8, 1  ;;  %v64_v14 = vld [vmem:[%s2164_s0 + $0x28] sm:$0x3]  ;;  %v140_v16 = vrot.slane %v63_v8, 2  ;;  %v87_v18 = vrot.slane %v1787_v2, 1  ;;  %v1828_v21 = vld [vmem:[%s2164_s0 + $0x30] sm:$0xff] }
  0x2a   :  { %v136_v15 = vsel %vm133_vm0, %v134_v5, %v135_v6  ;;  %v142_v17 = vrot.slane %v64_v14, 2  ;;  %v1823_v20 = vld [vmem:[%s2164_s0 + $0x48] sm:$0xff]  ;;  %v139_v22 = vsel %vm133_vm0, %v137_v7, %v138_v10  ;;  %v86_v23 = vsel %vm83_vm1, %v84_v11, %v85_v12  ;;  %v70_v26 = vld [vmem:[%s2164_s0 + $0x58] sm:$0x3]  ;;  %v1840_v27 = vld [vmem:[%s2164_s0 + $0x40] sm:$0xff]  ;;  %s1687_s9 = smov 32  }
  0x2b   :  { %v91_v24 = vsel %vm83_vm1, %v85_v12, %v90_v13  ;;  %v88_v25 = vrot.slane %v1797_v4, 1  ;;  %v69_v28 = vld [vmem:[%s2164_s0 + $0x50] sm:$0x3]  ;;  %v1482_v29 = vpack.i.bf16 %v139_v22, %v136_v15  ;;  %v141_v31 = vsel %vm133_vm0, %v135_v6, %v140_v16  ;;  %v1552_v33 = vld [vmem:[#allocation3 + $0x80] sm:$0xff]   ;;  %s1688_s10 = smov 16   ;;  %v1553_v42 = vld [vmem:[#allocation3 + $0x88] sm:$0xff]  }
  0x2c   :  { %v1472_v30 = vpack.i.bf16 %v91_v24, %v86_v23  ;;  %v143_v32 = vsel %vm133_vm0, %v138_v10, %v142_v17  ;;  %v92_v36 = vrot.slane %v64_v14, 1  ;;  %v97_v37 = vrot.slane %v1818_v19, 1  ;;  %v1554_v43 = vld [vmem:[#allocation3 + $0x40] sm:$0xff]   ;;  %472 = vmatpush1.bf16.msra.mxu1 %v1552_v33  ;;  %v1556_v60 = vld [vmem:[#allocation3 + $0x90] sm:$0xff]   ;;  %v1557_v61 = vld [vmem:[#allocation3 + $0x48] sm:$0xff]   ;;  %s1689_s0 = smov 8  }
  0x2d   :  { %v1487_v34 = vpack.i.bf16 %v143_v32, %v141_v31  ;;  %v89_v35 = vsel %vm83_vm1, %v87_v18, %v88_v25  ;;  %1483 = vrot.lane.b32.xlu1 %v1482_v29, %s1687_s9  ;;  %v98_v38 = vrot.slane %v1823_v20, 1  ;;  %v102_v39 = vrot.slane %v70_v26, 1  ;;  %v1555_v48 = vld [vmem:[#allocation3] sm:$0xff]   ;;  %473 = vmatprep.subr.bf16.mxu1 %v1686_v0  ;;  %v1558_v8 = vld [vmem:[#allocation3 + $0x8] sm:$0xff]   ;;  %v1559_v10 = vld [vmem:[#allocation3 + $0x98] sm:$0xff]   ;;  %s1690_s11 = smov 24  }
  0x2e   :  { %1473 = vrot.lane.b32.xlu0 %v1472_v30, %s1688_s10  ;;  %v94_v40 = vrot.slane %v1828_v21, 1  ;;  %v95_v41 = vrot.slane %v1840_v27, 1  ;;  %v93_v44 = vsel %vm83_vm1, %v88_v25, %v92_v36  ;;  %v100_v45 = vrot.slane %v69_v28, 1  ;;  %1393 = vmatprep.subr.bf16.mxu0 %v1554_v43  ;;  %v1560_v13 = vld [vmem:[#allocation3 + $0x50] sm:$0xff]   ;;  %v1563_v15 = vld [vmem:[#allocation3 + $0x58] sm:$0xff]   ;;  %v1562_v16 = vld [vmem:[#allocation3 + $0xa0] sm:$0xff]  }
  0x2f   :  { %v145_v46 = vrot.slane %v1840_v27, 2  ;;  %v148_v47 = vrot.slane %v1823_v20, 2  ;;  %v1477_v49 = vpack.i.bf16 %v93_v44, %v89_v35  ;;  %v99_v50 = vsel %vm83_vm1, %v97_v37, %v98_v38  ;;  %1394 = vmatpush3.bf16.msra.mxu0 %v1555_v48  ;;  %v1561_v14 = vld [vmem:[#allocation3 + $0x10] sm:$0xff]   ;;  %v1564_v17 = vld [vmem:[#allocation3 + $0x18] sm:$0xff]   ;;  %v1566_v18 = vld [vmem:[#allocation3 + $0x60] sm:$0xff]   ;;  %s1691_s12 = smov 48  }
  0x30   :  { %v103_v51 = vsel %vm83_vm1, %v98_v38, %v102_v39  ;;  %v96_v52 = vsel %vm83_vm1, %v94_v40, %v95_v41  ;;  %v101_v54 = vsel %vm83_vm1, %v95_v41, %v100_v45  ;;  %v150_v55 = vrot.slane %v69_v28, 2  ;;  %474 = vmatpush1.bf16.msra.mxu1 %v1553_v42  ;;  %1395 = vmatprep.subr.bf16.mxu0 %v1557_v61  ;;  %v1565_v22 = vld [vmem:[#allocation3 + $0xa8] sm:$0xff]   ;;  %v1567_v23 = vld [vmem:[#allocation3 + $0x20] sm:$0xff]   ;;  %v1568_v25 = vld [vmem:[#allocation3 + $0xb0] sm:$0xff]   ;;  %s1692_s3 = smov 40   ;;  %s1693_s13 = smov 56  }
  0x31   :  { %v1497_v53 = vpack.i.bf16 %v103_v51, %v99_v50  ;;  %v152_v56 = vrot.slane %v70_v26, 2  ;;  %1488 = vrot.lane.b32.xlu1 %v1487_v34, %s1687_s9  ;;  %v1492_v57 = vpack.i.bf16 %v101_v54, %v96_v52  ;;  %v144_v58 = vrot.slane %v1828_v21, 2  ;;  %475 = vmatprep.subr.bf16.mxu1 %v1686_v0  ;;  %v1569_v24 = vld [vmem:[#allocation3 + $0x68] sm:$0xff]   ;;  %v1572_v28 = vld [vmem:[#allocation3 + $0x70] sm:$0xff]   ;;  %v1571_v29 = vld [vmem:[#allocation3 + $0xb8] sm:$0xff]   ;;  %s1694_s14 = smov 80  }
  0x32   :  { %1478 = vrot.lane.b32.xlu0 %v1477_v49, %s1688_s10  ;;  %v147_v59 = vrot.slane %v1818_v19, 2  ;;  %v195_v62 = vpack.c.bf16 %v1840_v27, %v1828_v21  ;;  %v151_v63 = vsel %vm133_vm0, %v145_v46, %v150_v55  ;;  %v1570_v26 = vld [vmem:[#allocation3 + $0x28] sm:$0xff]   ;;  %v1573_v30 = vld [vmem:[#allocation3 + $0x30] sm:$0xff]   ;;  %v1575_v31 = vld [vmem:[#allocation3 + $0x78] sm:$0xff]   ;;  %vm120_vm2 = vcmask 130048   ;;  %s1695_s16 = smov 72  }
  0x33   :  { %v153_v5 = vsel %vm133_vm0, %v148_v47, %v152_v56  ;;  %v146_v6 = vsel %vm133_vm0, %v144_v58, %v145_v46  ;;  %1396 = vmatpush3.bf16.msra.mxu0 %v1558_v8  ;;  %v1574_v32 = vld [vmem:[#allocation3 + $0xc0] sm:$0xff]   ;;  %v1576_v33 = vld [vmem:[#allocation3 + $0x38] sm:$0xff]   ;;  %v1577_v34 = vld [vmem:[#allocation3 + $0xc8] sm:$0xff]   ;;  %vm170_vm3 = vcmask 261120   ;;  %vm415_vm4 = vcmask 392192   ;;  %s1696_s17 = smov 96  }
  0x34   :  { %v149_v7 = vsel %vm133_vm0, %v147_v59, %v148_v47  ;;  %v1507_v11 = vpack.i.bf16 %v153_v5, %v151_v63  ;;  %476 = vmatpush1.bf16.msra.mxu1 %v1556_v60  ;;  %1397 = vmatprep.subr.bf16.mxu0 %v1560_v13  ;;  %v1578_v35 = vld [vmem:[#allocation3 + $0xd0] sm:$0xff]   ;;  %vm544_vm5 = vcmask 1040384   ;;  %s1697_s18 = smov 88   ;;  %s1698_s19 = smov 112   ;;  %vm648_vm6 = vcmask 123904  }
  0x35   :  { %1498 = vrot.lane.b32.xlu1 %v1497_v53, %s1688_s10  ;;  %v1502_v12 = vpack.i.bf16 %v149_v7, %v146_v6  ;;  %477 = vmatprep.subr.bf16.mxu1 %v1686_v0  ;;  %s1699_s20 = smov 104   ;;  %s1700_s21 = smov 120   ;;  %vm672_vm7 = vcmask 64512   ;;  %vm719_vm8 = vcmask 122880   ;;  %vm714_vm9 = vcmask 130049  }
  0x36   :  { %1493 = vrot.lane.b32.xlu0 %v1492_v57, %s1688_s10 }
  0x37   :  { %1398 = vmatpush3.bf16.msra.mxu0 %v1561_v14 }
  0x38   :  { %478 = vmatpush1.bf16.msra.mxu1 %v1559_v10  ;;  %1399 = vmatprep.subr.bf16.mxu0 %v1563_v15 }
  0x39   :  { %1508 = vrot.lane.b32.xlu1 %v1507_v11, %s1687_s9  ;;  %479 = vmatprep.subr.bf16.mxu1 %v1686_v0 }
  0x3a   :  { %1503 = vrot.lane.b32.xlu0 %v1502_v12, %s1687_s9 }
  0x3b   :  { %1400 = vmatpush3.bf16.msra.mxu0 %v1564_v17 }
  0x3c   :  { %480 = vmatpush1.bf16.msra.mxu1 %v1562_v16  ;;  %1401 = vmatprep.subr.bf16.mxu0 %v1566_v18 }
  0x3d   :  { %481 = vmatprep.subr.bf16.mxu1 %v1686_v0 }
  0x3f   :  { %1402 = vmatpush3.bf16.msra.mxu0 %v1567_v23 }
  0x40   :  { %482 = vmatpush1.bf16.msra.mxu1 %v1565_v22  ;;  %1403 = vmatprep.subr.bf16.mxu0 %v1569_v24 }
  0x41   :  { %483 = vmatprep.subr.bf16.mxu1 %v1686_v0 }
  0x43   :  { %1404 = vmatpush3.bf16.msra.mxu0 %v1570_v26 }
  0x44   :  { %484 = vmatpush1.bf16.msra.mxu1 %v1568_v25  ;;  %1405 = vmatprep.subr.bf16.mxu0 %v1572_v28 }
  0x45   :  { %485 = vmatprep.subr.bf16.mxu1 %v1686_v0 }
  0x47   :  { %1406 = vmatpush3.bf16.msra.mxu0 %v1573_v30 }
  0x48   :  { %486 = vmatpush1.bf16.msra.mxu1 %v1571_v29  ;;  %1407 = vmatprep.subr.bf16.mxu0 %v1575_v31 }
  0x49   :  { %487 = vmatprep.subr.bf16.mxu1 %v1686_v0 }
  0x4b   :  { %1408 = vmatpush3.bf16.msra.mxu0 %v1576_v33 }
  0x4c   :  { %488 = vmatpush1.bf16.msra.mxu1 %v1574_v32 }
  0x4d   :  { %489 = vmatprep.subr.bf16.mxu1 %v1686_v0 }
  0x50   :  { %490 = vmatpush1.bf16.msra.mxu1 %v1577_v34 }
  0x51   :  { %491 = vmatprep.subr.bf16.mxu1 %v1686_v0 }
  0x54   :  { %492 = vmatpush1.bf16.msra.mxu1 %v1578_v35 }
  0x55   :  { %1134 = vmatprep.subr.bf16.mxu1 %v1686_v0 }
  0x9f   :  { %v1484_v36 = vpop.permute.xlu1 %1483 }
  0xa0   :  { %v1474_v37 = vpop.permute.xlu0 %1473  ;;  %v1486_v40 = vunpack.i.h.bf16 %v1484_v36  ;;  %v1485_v41 = vunpack.i.l.bf16 %v1484_v36 }
  0xa1   :  { %v1476_v38 = vunpack.i.h.bf16 %v1474_v37  ;;  %v1475_v39 = vunpack.i.l.bf16 %v1474_v37 }
  0xa3   :  { %v183_v42 = vsel %vm120_vm2, %v1787_v2, %v1475_v39  ;;  %v184_v43 = vsel %vm120_vm2, %v1797_v4, %v1476_v38  ;;  %v1489_v44 = vpop.permute.xlu1 %1488  ;;  %v171_v2 = vsel %vm170_vm3, %v1485_v41, %v1486_v40 }
  0xa4   :  { %v1479_v45 = vpop.permute.xlu0 %1478  ;;  %v192_v46 = vpack.c.bf16 %v184_v43, %v183_v42  ;;  %v1491_v47 = vunpack.i.h.bf16 %v1489_v44  ;;  %v1490_v48 = vunpack.i.l.bf16 %v1489_v44 }
  0xa5   :  { %v1481_v49 = vunpack.i.h.bf16 %v1479_v45  ;;  %v1480_v50 = vunpack.i.l.bf16 %v1479_v45 }
  0xa6   :  { %454 = vmatprep.mubr.bf16.mxu0 %v192_v46  ;;  %v172_v4 = vsel %vm170_vm3, %v1490_v48, %v1491_v47 }
  0xa7   :  { %v121_v51 = vsel %vm120_vm2, %v1475_v39, %v1480_v50  ;;  %v122_v52 = vsel %vm120_vm2, %v1476_v38, %v1481_v49  ;;  %455 = vmatmul.mubr.bf16.vlgmr.msra.gmra.mrb[0].mxu0 %v191_v9  ;;  %v1499_v53 = vpop.permute.xlu1 %1498  ;;  %v194_v55 = vpack.c.bf16 %v172_v4, %v171_v2 }
  0xa8   :  { %v1494_v54 = vpop.permute.xlu0 %1493  ;;  %v187_v56 = vsel %vm170_vm3, %v121_v51, %v1485_v41  ;;  %v188_v57 = vsel %vm170_vm3, %v122_v52, %v1490_v48  ;;  %v1501_v60 = vunpack.i.h.bf16 %v1499_v53  ;;  %v1500_v61 = vunpack.i.l.bf16 %v1499_v53 }
  0xa9   :  { %v1496_v58 = vunpack.i.h.bf16 %v1494_v54  ;;  %v1495_v59 = vunpack.i.l.bf16 %v1494_v54  ;;  %1362 = vmatprep.mubr.msk.bf16.mxu1 %vm415_vm4, %v194_v55  ;;  %v193_v63 = vpack.c.bf16 %v188_v57, %v187_v56 }
  0xab   :  { %v185_v1 = vsel %vm120_vm2, %v1818_v19, %v1495_v59  ;;  %v186_v3 = vsel %vm120_vm2, %v1823_v20, %v1496_v58  ;;  %504 = vmatmul.mubr.bf16.vlgmr.msra.gmra.mrb[0].mxu1 %v193_v63  ;;  %v1509_v9 = vpop.permute.xlu1 %1508  ;;  %v124_v12 = vsel %vm120_vm2, %v1496_v58, %v1501_v60  ;;  %v123_v13 = vsel %vm120_vm2, %v1495_v59, %v1500_v61 }
  0xac   :  { %v1504_v5 = vpop.permute.xlu0 %1503  ;;  %v196_v6 = vpack.c.bf16 %v186_v3, %v185_v1  ;;  %v1511_v7 = vunpack.i.h.bf16 %v1509_v9  ;;  %v1510_v8 = vunpack.i.l.bf16 %v1509_v9  ;;  %v1701_v3 = vmov 0.0  }
  0xad   :  { %v1506_v10 = vunpack.i.h.bf16 %v1504_v5  ;;  %v1505_v11 = vunpack.i.l.bf16 %v1504_v5  ;;  %647 = vst [vmem:[#allocation2 + $0x20] sm:$0x3] %v1701_v3  ;;  %649 = vst.msk [vmem:[#allocation2 + $0x28] sm:$0x3] %vm648_vm6, %v1701_v3 }
  0xae   :  { %462 = vmatprep.mubr.bf16.mxu0 %v196_v6  ;;  %v174_v14 = vsel %vm170_vm3, %v1510_v8, %v1511_v7  ;;  %v190_v15 = vsel %vm170_vm3, %v124_v12, %v1510_v8  ;;  %643 = vst [vmem:[#allocation2] sm:$0xff] %v1701_v3  ;;  %644 = vst.msk [vmem:[#allocation2 + $0x8] sm:$0xff] %vm120_vm2, %v1701_v3 }
  0xaf   :  { %v173_v19 = vsel %vm170_vm3, %v1505_v11, %v1506_v10  ;;  %463 = vmatmul.mubr.bf16.gmra.mrb[4].mxu0 %v195_v62  ;;  %v189_v20 = vsel %vm170_vm3, %v123_v13, %v1505_v11  ;;  %646 = vst.msk [vmem:[#allocation2 + $0x18] sm:$0xff] %vm120_vm2, %v1701_v3  ;;  %650 = vst [vmem:[#allocation2 + $0x30] sm:$0xff] %v1701_v3 }
  0xb0   :  { %v198_v16 = vpack.c.bf16 %v174_v14, %v173_v19  ;;  %v197_v17 = vpack.c.bf16 %v190_v15, %v189_v20  ;;  %651 = vst.msk [vmem:[#allocation2 + $0x38] sm:$0xff] %vm120_vm2, %v1701_v3  ;;  %653 = vst.msk [vmem:[#allocation2 + $0x48] sm:$0xff] %vm120_vm2, %v1701_v3 }
  0xb1   :  { %654 = vst [vmem:[#allocation2 + $0x50] sm:$0x3] %v1701_v3  ;;  %655 = vst.msk [vmem:[#allocation2 + $0x58] sm:$0x3] %vm648_vm6, %v1701_v3 }
  0xb2   :  { %1363 = vmatprep.mubr.msk.bf16.mxu1 %vm415_vm4, %v198_v16 }
  0xb3   :  { %512 = vmatmul.mubr.bf16.gmra.mrb[4].mxu1 %v197_v17 }
 0x17a   :  { %v1409_v18 = vpop.f32.mrb[0].mxu0 }
 0x17b   :  { %v1410_v22 = vpop.f32.mrb[1].mxu0 }
 0x17c   :  { %v1411_v23 = vadd.f32 %v1410_v22, %v1409_v18  ;;  %v1412_v24 = vpop.f32.mrb[2].mxu0 }
 0x17d   :  { %v1413_v25 = vpop.f32.mrb[3].mxu0 }
 0x17e   :  { %v1414_v26 = vadd.f32 %v1413_v25, %v1412_v24  ;;  %v505_v28 = vpop.f32.mrb[0].mxu1 }
 0x17f   :  { %v1914_v29 = vadd.f32 %v1411_v23, %v505_v28  ;;  %v507_v21 = vpop.f32.mrb[1].mxu1 }
 0x180   :  { %v508_v27 = vpop.f32.mrb[2].mxu1 }
 0x181   :  { %v1916_v62 = vadd.f32 %v1414_v26, %v508_v27  ;;  %v510_v30 = vpop.f32.mrb[3].mxu1  ;;  %v531_v39 = vmul.f32 %v1914_v29, %v1914_v29 }
 0x182   :  { %v1415_v31 = vpop.f32.mrb[4].mxu0 }
 0x183   :  { %v1416_v32 = vpop.f32.mrb[5].mxu0  ;;  %v532_v36 = vmul.f32 %v1916_v62, %v1916_v62  ;;  %v522_v40 = vadd.f32 %v1916_v62, %v1914_v29 }
 0x184   :  { %v1417_v33 = vadd.f32 %v1416_v32, %v1415_v31  ;;  %v1418_v34 = vpop.f32.mrb[6].mxu0 }
 0x185   :  { %v1419_v35 = vpop.f32.mrb[7].mxu0  ;;  %v535_v44 = vadd.f32 %v532_v36, %v531_v39 }
 0x186   :  { %v1420_v37 = vadd.f32 %v1419_v35, %v1418_v34  ;;  %v513_v38 = vpop.f32.mrb[4].mxu1 }
 0x187   :  { %v1924_v41 = vadd.f32 %v1417_v33, %v513_v38  ;;  %v515_v42 = vpop.f32.mrb[5].mxu1 }
 0x188   :  { %v516_v43 = vpop.f32.mrb[6].mxu1  ;;  %v1702_v42 = vmov 1966171168  }
 0x189   :  { %v523_v45 = vadd.f32 %v522_v40, %v1924_v41  ;;  %v533_v46 = vmul.f32 %v1924_v41, %v1924_v41  ;;  %v1929_v47 = vadd.f32 %v1420_v37, %v516_v43  ;;  %v518_v48 = vpop.f32.mrb[7].mxu1  ;;  %v601_v43 = vunpack.c.l.s4 %v1702_v42 }
 0x18b   :  { %v536_v49 = vadd.f32 %v535_v44, %v533_v46  ;;  %v524_v50 = vadd.f32 %v523_v45, %v1929_v47  ;;  %v534_v51 = vmul.f32 %v1929_v47, %v1929_v47  ;;  %v603_v44 = vlaneseq }
 0x18c   :  { %v602_v45 = vunpack.c.0.s8 %v601_v43 }
 0x18d   :  { %v525_v52 = vrot.slane %v524_v50, 4  ;;  %v537_v2 = vadd.f32 %v536_v49, %v534_v51  ;;  %v604_v46 = vshrl.u32 %v603_v44, 7 }
 0x18f   :  { %v526_v4 = vadd.f32 %v525_v52, %v524_v50  ;;  %v538_v53 = vrot.slane %v537_v2, 4  ;;  %v1954_v48 = vsub.s32 %v602_v45, %v604_v46  ;;  %v520_v52 = vld [vmem:[%s2168_s4] sm:$0x1] }
 0x191   :  { %v527_v54 = vrot.slane %v526_v4, 2  ;;  %v539_v55 = vadd.f32 %v538_v53, %v537_v2  ;;  %v1960_v2 = vsub.s32 0, %v604_v46 }
 0x193   :  { %v528_v56 = vadd.f32 %v527_v54, %v526_v4  ;;  %v540_v57 = vrot.slane %v539_v55, 2  ;;  %v521_v54 = vld [vmem:[%s2169_s5] sm:$0x1] }
 0x195   :  { %v529_v58 = vrot.slane %v528_v56, 1  ;;  %v541_v59 = vadd.f32 %v540_v57, %v539_v55 }
 0x197   :  { %v542_v60 = vrot.slane %v541_v59, 1  ;;  %v530_v61 = vadd.f32 %v529_v58, %v528_v56 }
 0x199   :  { %v543_v63 = vadd.f32 %v542_v60, %v541_v59 }
 0x19b   :  { %v545_v1 = vsel %vm544_vm5, %v530_v61, %v543_v63 }
 0x19c   :  { %549 = vrot.lane.b32.xlu1 %v545_v1, %s1688_s10  ;;  %546 = vrot.lane.b32.xlu0 %v545_v1, %s1689_s0 }
 0x1a0   :  { %555 = vrot.lane.b32.xlu1 %v545_v1, %s1687_s9  ;;  %552 = vrot.lane.b32.xlu0 %v545_v1, %s1690_s11 }
 0x1a4   :  { %561 = vrot.lane.b32.xlu1 %v545_v1, %s1691_s12  ;;  %558 = vrot.lane.b32.xlu0 %v545_v1, %s1692_s3 }
 0x1a8   :  { %567 = vrot.lane.b32.xlu1 %v545_v1, %s1683_s15  ;;  %564 = vrot.lane.b32.xlu0 %v545_v1, %s1693_s13 }
 0x1ac   :  { %573 = vrot.lane.b32.xlu1 %v545_v1, %s1694_s14  ;;  %570 = vrot.lane.b32.xlu0 %v545_v1, %s1695_s16 }
 0x1b0   :  { %579 = vrot.lane.b32.xlu1 %v545_v1, %s1696_s17  ;;  %576 = vrot.lane.b32.xlu0 %v545_v1, %s1697_s18 }
 0x1b4   :  { %585 = vrot.lane.b32.xlu1 %v545_v1, %s1698_s19  ;;  %582 = vrot.lane.b32.xlu0 %v545_v1, %s1699_s20 }
 0x1b8   :  { %588 = vrot.lane.b32.xlu0 %v545_v1, %s1700_s21 }
 0x20e   :  { %v550_v9 = vpop.permute.xlu1 %549  ;;  %v547_v5 = vpop.permute.xlu0 %546 }
 0x20f   :  { %v548_v6 = vadd.f32 %v547_v5, %v545_v1 }
 0x211   :  { %v551_v7 = vadd.f32 %v550_v9, %v548_v6 }
 0x212   :  { %v556_v8 = vpop.permute.xlu1 %555  ;;  %v553_v10 = vpop.permute.xlu0 %552 }
 0x213   :  { %v554_v11 = vadd.f32 %v553_v10, %v551_v7 }
 0x215   :  { %v557_v12 = vadd.f32 %v556_v8, %v554_v11  ;;  %v1582_v11 = vld [vmem:[#allocation6] sm:$0xff]  }
 0x216   :  { %v562_v13 = vpop.permute.xlu1 %561  ;;  %v559_v14 = vpop.permute.xlu0 %558 }
 0x217   :  { %v560_v19 = vadd.f32 %v559_v14, %v557_v12  ;;  %v1585_v12 = vld [vmem:[#allocation6 + $0x8] sm:$0xff]   ;;  %v1583_v14 = vld [vmem:[#allocation6 + $0x90] sm:$0xff]  }
 0x219   :  { %v563_v20 = vadd.f32 %v562_v13, %v560_v19  ;;  %v1587_v13 = vld [vmem:[#allocation6 + $0x50] sm:$0xff]  }
 0x21a   :  { %v568_v15 = vpop.permute.xlu1 %567  ;;  %v565_v16 = vpop.permute.xlu0 %564  ;;  %v1588_v19 = vld [vmem:[#allocation6 + $0x10] sm:$0xff]  }
 0x21b   :  { %v566_v17 = vadd.f32 %v565_v16, %v563_v20  ;;  %v1590_v20 = vld [vmem:[#allocation6 + $0x58] sm:$0xff]  }
 0x21c   :  { %v1591_v16 = vld [vmem:[#allocation6 + $0x18] sm:$0xff]  }
 0x21d   :  { %v569_v18 = vadd.f32 %v568_v15, %v566_v17  ;;  %v1586_v15 = vld [vmem:[#allocation6 + $0x98] sm:$0xff]   ;;  %v1593_v17 = vld [vmem:[#allocation6 + $0x60] sm:$0xff]  }
 0x21e   :  { %v574_v22 = vpop.permute.xlu1 %573  ;;  %v571_v23 = vpop.permute.xlu0 %570 }
 0x21f   :  { %v572_v24 = vadd.f32 %v571_v23, %v569_v18  ;;  %v1589_v18 = vld [vmem:[#allocation6 + $0xa0] sm:$0xff]   ;;  %v1596_v23 = vld [vmem:[#allocation6 + $0x68] sm:$0xff]  }
 0x221   :  { %v575_v25 = vadd.f32 %v574_v22, %v572_v24  ;;  %v1594_v22 = vld [vmem:[#allocation6 + $0x20] sm:$0xff]   ;;  %v1592_v24 = vld [vmem:[#allocation6 + $0xa8] sm:$0xff]  }
 0x222   :  { %v580_v26 = vpop.permute.xlu1 %579  ;;  %v577_v28 = vpop.permute.xlu0 %576 }
 0x223   :  { %v578_v21 = vadd.f32 %v577_v28, %v575_v25  ;;  %v1597_v25 = vld [vmem:[#allocation6 + $0x28] sm:$0xff]   ;;  %v1595_v28 = vld [vmem:[#allocation6 + $0xb0] sm:$0xff]  }
 0x225   :  { %v581_v27 = vadd.f32 %v580_v26, %v578_v21  ;;  %v1599_v26 = vld [vmem:[#allocation6 + $0x70] sm:$0xff]  }
 0x226   :  { %v583_v30 = vpop.permute.xlu0 %582  ;;  %v586_v32 = vpop.permute.xlu1 %585  ;;  %v1600_v21 = vld [vmem:[#allocation6 + $0x30] sm:$0xff]  }
 0x227   :  { %v584_v31 = vadd.f32 %v583_v30, %v581_v27  ;;  %v1598_v27 = vld [vmem:[#allocation6 + $0xb8] sm:$0xff]   ;;  %v1601_v30 = vld [vmem:[#allocation6 + $0xc0] sm:$0xff]  }
 0x229   :  { %v587_v33 = vadd.f32 %v586_v32, %v584_v31 }
 0x22a   :  { %v589_v34 = vpop.permute.xlu0 %588 }
 0x22b   :  { %v590_v35 = vadd.f32 %v589_v34, %v587_v33 }
 0x22d   :  { %v591_v36 = vmul.f32 0.001953125, %v590_v35 }
 0x22f   :  { %v592_v37 = vmul.f32 %v591_v36, %v591_v36 }
 0x231   :  { %v594_v38 = vrot.slane %v592_v37, 7 }
 0x233   :  { %v596_v39 = vsub.f32 %v591_v36, %v594_v38 }
 0x235   :  { %v597_v40 = vadd.f32 1e-05, %v596_v39 }
 0x237   :  { %1606 = vrsqrt.f32 %v597_v40 }
 0x241   :  { %v1607_v49 = vpop.eup %1606 }
 0x242   :  { %v606_v50 = vrot.slane %v1607_v49, %v1954_v48 }
 0x244   :  { %v607_v51 = vcombine.high %v606_v50, %v606_v50 }
 0x246   :  { %v614_v4 = vrot.slane %v607_v51, %v1954_v48 }
 0x248   :  { %v616_v53 = vmul.f32 %v614_v4, %v520_v52 }
 0x24a   :  { %v621_v55 = vrot.slane %v616_v53, %v1960_v2  ;;  %v627_v56 = vmul.f32 %v616_v53, %v591_v36 }
 0x24c   :  { %v628_v57 = vsub.f32 %v521_v54, %v627_v56  ;;  %v624_v59 = vmul.f32 %v621_v55, %v1916_v62  ;;  %v623_v60 = vmul.f32 %v621_v55, %v1914_v29  ;;  %v626_v1 = vmul.f32 %v621_v55, %v1929_v47  ;;  %v1579_v29 = vld [vmem:[#allocation6 + $0x80] sm:$0xff]   ;;  %v1584_v47 = vld [vmem:[#allocation6 + $0x48] sm:$0xff]   ;;  %v1603_v56 = vld [vmem:[#allocation6 + $0x38] sm:$0xff]  }
 0x24d   :  { %v625_v3 = vmul.f32 %v621_v55, %v1924_v41  ;;  %v1581_v62 = vld [vmem:[#allocation6 + $0x40] sm:$0xff]   ;;  %1135 = vmatpush1.bf16.msra.mxu1 %v1579_v29  ;;  %v1580_v41 = vld [vmem:[#allocation6 + $0x88] sm:$0xff]   ;;  %v1602_v55 = vld [vmem:[#allocation6 + $0x78] sm:$0xff]  }
 0x24e   :  { %v633_v58 = vrot.slane %v628_v57, %v1960_v2  ;;  %1421 = vmatprep.subr.bf16.mxu0 %v1581_v62  ;;  %1136 = vmatprep.subr.bf16.mxu1 %v1686_v0  ;;  %v1604_v57 = vld [vmem:[#allocation6 + $0xc8] sm:$0xff]  }
 0x24f   :  { %1422 = vmatpush3.bf16.msra.mxu0 %v1582_v11 }
 0x250   :  { %v636_v61 = vadd.f32 %v633_v58, %v624_v59  ;;  %v635_v63 = vadd.f32 %v633_v58, %v623_v60  ;;  %v638_v6 = vadd.f32 %v633_v58, %v626_v1  ;;  %v637_v7 = vadd.f32 %v633_v58, %v625_v3  ;;  %1423 = vmatprep.subr.bf16.mxu0 %v1584_v47  ;;  %v1605_v47 = vld [vmem:[#allocation6 + $0xd0] sm:$0xff]  }
 0x251   :  { %1137 = vmatpush1.bf16.msra.mxu1 %v1580_v41 }
 0x252   :  { %v640_v9 = vmax.f32 %v636_v61, 0.0  ;;  %v639_v5 = vmax.f32 %v635_v63, 0.0  ;;  %v642_v8 = vmax.f32 %v638_v6, 0.0  ;;  %v641_v10 = vmax.f32 %v637_v7, 0.0  ;;  %1138 = vmatprep.subr.bf16.mxu1 %v1686_v0 }
 0x253   :  { %1424 = vmatpush3.bf16.msra.mxu0 %v1585_v12 }
 0x254   :  { %662 = vrot.lane.b32.xlu0 %v640_v9, %s1689_s0  ;;  %660 = vrot.lane.b32.xlu1 %v639_v5, %s1689_s0 }
 0x255   :  { %1425 = vmatprep.subr.bf16.mxu0 %v1587_v13  ;;  %1139 = vmatpush1.bf16.msra.mxu1 %v1583_v14 }
 0x256   :  { %1140 = vmatprep.subr.bf16.mxu1 %v1686_v0 }
 0x257   :  { %1426 = vmatpush3.bf16.msra.mxu0 %v1588_v19 }
 0x258   :  { %666 = vrot.lane.b32.xlu0 %v642_v8, %s1689_s0  ;;  %664 = vrot.lane.b32.xlu1 %v641_v10, %s1689_s0 }
 0x259   :  { %1427 = vmatprep.subr.bf16.mxu0 %v1590_v20  ;;  %1141 = vmatpush1.bf16.msra.mxu1 %v1586_v15 }
 0x25a   :  { %1142 = vmatprep.subr.bf16.mxu1 %v1686_v0 }
 0x25b   :  { %1428 = vmatpush3.bf16.msra.mxu0 %v1591_v16 }
 0x25c   :  { %1429 = vmatprep.subr.bf16.mxu0 %v1593_v17 }
 0x25d   :  { %1143 = vmatpush1.bf16.msra.mxu1 %v1589_v18 }
 0x25e   :  { %1144 = vmatprep.subr.bf16.mxu1 %v1686_v0 }
 0x25f   :  { %1430 = vmatpush3.bf16.msra.mxu0 %v1594_v22 }
 0x260   :  { %1431 = vmatprep.subr.bf16.mxu0 %v1596_v23 }
 0x261   :  { %1145 = vmatpush1.bf16.msra.mxu1 %v1592_v24 }
 0x262   :  { %1146 = vmatprep.subr.bf16.mxu1 %v1686_v0 }
 0x263   :  { %1432 = vmatpush3.bf16.msra.mxu0 %v1597_v25 }
 0x264   :  { %1433 = vmatprep.subr.bf16.mxu0 %v1599_v26 }
 0x265   :  { %1147 = vmatpush1.bf16.msra.mxu1 %v1595_v28 }
 0x266   :  { %1148 = vmatprep.subr.bf16.mxu1 %v1686_v0 }
 0x267   :  { %1434 = vmatpush3.bf16.msra.mxu0 %v1600_v21 }
 0x268   :  { %1435 = vmatprep.subr.bf16.mxu0 %v1602_v55 }
 0x269   :  { %1149 = vmatpush1.bf16.msra.mxu1 %v1598_v27 }
 0x26a   :  { %1150 = vmatprep.subr.bf16.mxu1 %v1686_v0 }
 0x26b   :  { %1436 = vmatpush3.bf16.msra.mxu0 %v1603_v56 }
 0x26d   :  { %1151 = vmatpush1.bf16.msra.mxu1 %v1601_v30 }
 0x26e   :  { %1152 = vmatprep.subr.bf16.mxu1 %v1686_v0 }
 0x271   :  { %1153 = vmatpush1.bf16.msra.mxu1 %v1604_v57 }
 0x272   :  { %1154 = vmatprep.subr.bf16.mxu1 %v1686_v0 }
 0x275   :  { %1155 = vmatpush1.bf16.msra.mxu1 %v1605_v47 }
 0x2c6   :  { %v663_v31 = vpop.permute.xlu0 %662  ;;  %v661_v32 = vpop.permute.xlu1 %660 }
 0x2c7   :  { %v674_v33 = vsel %vm672_vm7, 0.0, %v663_v31  ;;  %v678_v34 = vsel %vm672_vm7, %v663_v31, 0.0  ;;  %v673_v35 = vsel %vm672_vm7, 0.0, %v661_v32  ;;  %v677_v36 = vsel %vm672_vm7, %v661_v32, 0.0 }
 0x2c8   :  { %v691_v37 = vrot.slane %v674_v33, 7  ;;  %v693_v38 = vrot.slane %v678_v34, 7  ;;  %v689_v39 = vrot.slane %v673_v35, 7  ;;  %v690_v40 = vrot.slane %v677_v36, 7 }
 0x2ca   :  { %718 = vst [vmem:[#allocation2 + $0x20] sm:$0x1] %v691_v37  ;;  %720 = vst.msk [vmem:[#allocation2 + $0x28] sm:$0x1] %vm719_vm8, %v693_v38  ;;  %v1991_v42 = vsel %vm544_vm5, %v689_v39, %v691_v37  ;;  %v694_v43 = vsel %vm544_vm5, %v690_v40, %v693_v38  ;;  %v667_v44 = vpop.permute.xlu0 %666  ;;  %v665_v45 = vpop.permute.xlu1 %664 }
 0x2cb   :  { %713 = vst [vmem:[#allocation2] sm:$0xfe] %v689_v39  ;;  %715 = vst.msk [vmem:[#allocation2 + $0x8] sm:$0xfe] %vm714_vm9, %v690_v40  ;;  %v676_v46 = vsel %vm672_vm7, 0.0, %v667_v44  ;;  %v680_v49 = vsel %vm672_vm7, %v667_v44, 0.0 }
 0x2cc   :  { %717 = vst.msk [vmem:[#allocation2 + $0x18] sm:$0xff] %vm120_vm2, %v694_v43  ;;  %v675_v50 = vsel %vm672_vm7, 0.0, %v665_v45  ;;  %v679_v51 = vsel %vm672_vm7, %v665_v45, 0.0  ;;  %v697_v52 = vrot.slane %v676_v46, 7  ;;  %v699_v4 = vrot.slane %v680_v49, 7 }
 0x2cd   :  { %v695_v53 = vrot.slane %v675_v50, 7  ;;  %v696_v54 = vrot.slane %v679_v51, 7  ;;  %v752_v1 = vrot.slane %v1991_v42, 1  ;;  %v800_v3 = vrot.slane %v1991_v42, 2 }
 0x2ce   :  { %725 = vst [vmem:[#allocation2 + $0x50] sm:$0x1] %v697_v52  ;;  %726 = vst.msk [vmem:[#allocation2 + $0x58] sm:$0x1] %vm719_vm8, %v699_v4 }
 0x2cf   :  { %v2002_v58 = vsel %vm544_vm5, %v695_v53, %v697_v52  ;;  %v700_v59 = vsel %vm544_vm5, %v696_v54, %v699_v4  ;;  %721 = vst [vmem:[#allocation2 + $0x30] sm:$0xfe] %v695_v53  ;;  %722 = vst.msk [vmem:[#allocation2 + $0x38] sm:$0xfe] %vm714_vm9, %v696_v54 }
 0x2d0   :  { %724 = vst.msk [vmem:[#allocation2 + $0x48] sm:$0xff] %vm120_vm2, %v700_v59  ;;  %v762_v37 = vrot.slane %v2002_v58, 1  ;;  %v810_v52 = vrot.slane %v2002_v58, 2 }
 0x2d1   :  { %v732_v61 = vld [vmem:[#allocation2 + $0x28] sm:$0x3]  ;;  %v731_v7 = vld [vmem:[#allocation2 + $0x20] sm:$0x3] }
 0x2d2   :  { %v2008_v60 = vld [vmem:[#allocation2 + $0x8] sm:$0xff]  ;;  %v2010_v63 = vld [vmem:[#allocation2] sm:$0xff]  ;;  %v759_v6 = vrot.slane %v732_v61, 1  ;;  %v757_v29 = vrot.slane %v731_v7, 1  ;;  %v805_v11 = vrot.slane %v731_v7, 2  ;;  %v807_v12 = vrot.slane %v732_v61, 2 }
 0x2d3   :  { %v2014_v9 = vld [vmem:[#allocation2 + $0x18] sm:$0xff]  ;;  %v754_v5 = vrot.slane %v2008_v60, 1  ;;  %v751_v8 = vrot.slane %v2010_v63, 1  ;;  %v855_v0 = vpack.c.bf16 %v1991_v42, %v2010_v63  ;;  %v799_v13 = vrot.slane %v2010_v63, 2 }
 0x2d4   :  { %v755_v10 = vrot.slane %v2014_v9, 1  ;;  %v803_v62 = vrot.slane %v2014_v9, 2  ;;  %v802_v14 = vrot.slane %v2008_v60, 2  ;;  %v758_v15 = vsel %vm83_vm1, %v752_v1, %v757_v29 }
 0x2d5   :  { %v753_v41 = vsel %vm83_vm1, %v751_v8, %v752_v1  ;;  %v806_v16 = vsel %vm133_vm0, %v800_v3, %v805_v11  ;;  %v738_v18 = vld [vmem:[#allocation2 + $0x58] sm:$0x3]  ;;  %v801_v26 = vsel %vm133_vm0, %v799_v13, %v800_v3  ;;  %v737_v21 = vld [vmem:[#allocation2 + $0x50] sm:$0x3] }
 0x2d6   :  { %v756_v19 = vsel %vm83_vm1, %v754_v5, %v755_v10  ;;  %v760_v20 = vsel %vm83_vm1, %v755_v10, %v759_v6  ;;  %v2029_v17 = vld [vmem:[#allocation2 + $0x38] sm:$0xff]  ;;  %v2031_v22 = vld [vmem:[#allocation2 + $0x30] sm:$0xff]  ;;  %v1512_v24 = vpack.i.bf16 %v758_v15, %v753_v41  ;;  %v808_v25 = vsel %vm133_vm0, %v803_v62, %v807_v12 }
 0x2d7   :  { %v1517_v23 = vpack.i.bf16 %v760_v20, %v756_v19  ;;  %v2035_v28 = vld [vmem:[#allocation2 + $0x48] sm:$0xff]  ;;  %v804_v27 = vsel %vm133_vm0, %v802_v14, %v803_v62  ;;  %v764_v30 = vrot.slane %v2029_v17, 1  ;;  %v769_v32 = vrot.slane %v738_v18, 1 }
 0x2d8   :  { %v765_v31 = vrot.slane %v2035_v28, 1  ;;  %1513 = vrot.lane.b32.xlu1 %v1512_v24, %s1688_s10  ;;  %v761_v33 = vrot.slane %v2031_v22, 1  ;;  %v767_v34 = vrot.slane %v737_v21, 1  ;;  %v1527_v35 = vpack.i.bf16 %v808_v25, %v806_v16 }
 0x2d9   :  { %1518 = vrot.lane.b32.xlu0 %v1517_v23, %s1688_s10  ;;  %v1522_v36 = vpack.i.bf16 %v804_v27, %v801_v26  ;;  %v813_v39 = vrot.slane %v2035_v28, 2  ;;  %v815_v40 = vrot.slane %v737_v21, 2  ;;  %v817_v43 = vrot.slane %v738_v18, 2 }
 0x2da   :  { %v766_v38 = vsel %vm83_vm1, %v764_v30, %v765_v31  ;;  %v770_v44 = vsel %vm83_vm1, %v765_v31, %v769_v32  ;;  %v763_v45 = vsel %vm83_vm1, %v761_v33, %v762_v37  ;;  %v768_v46 = vsel %vm83_vm1, %v762_v37, %v767_v34 }
 0x2db   :  { %v809_v49 = vrot.slane %v2031_v22, 2  ;;  %v812_v50 = vrot.slane %v2029_v17, 2  ;;  %v859_v51 = vpack.c.bf16 %v2002_v58, %v2031_v22  ;;  %v1537_v4 = vpack.i.bf16 %v770_v44, %v766_v38 }
 0x2dc   :  { %1523 = vrot.lane.b32.xlu1 %v1522_v36, %s1687_s9  ;;  %v1532_v53 = vpack.i.bf16 %v768_v46, %v763_v45  ;;  %v816_v54 = vsel %vm133_vm0, %v810_v52, %v815_v40  ;;  %v818_v55 = vsel %vm133_vm0, %v813_v39, %v817_v43 }
 0x2dd   :  { %1528 = vrot.lane.b32.xlu0 %v1527_v35, %s1687_s9  ;;  %v811_v56 = vsel %vm133_vm0, %v809_v49, %v810_v52  ;;  %v814_v57 = vsel %vm133_vm0, %v812_v50, %v813_v39  ;;  %v1547_v59 = vpack.i.bf16 %v818_v55, %v816_v54 }
 0x2de   :  { %v1542_v61 = vpack.i.bf16 %v814_v57, %v811_v56 }
 0x2e0   :  { %1533 = vrot.lane.b32.xlu1 %v1532_v53, %s1688_s10 }
 0x2e1   :  { %1538 = vrot.lane.b32.xlu0 %v1537_v4, %s1688_s10 }
 0x2e4   :  { %1543 = vrot.lane.b32.xlu1 %v1542_v61, %s1687_s9 }
 0x2e5   :  { %1548 = vrot.lane.b32.xlu0 %v1547_v59, %s1687_s9 }
 0x34a   :  { %v1514_v1 = vpop.permute.xlu1 %1513 }
 0x34b   :  { %v1519_v58 = vpop.permute.xlu0 %1518  ;;  %v1516_v3 = vunpack.i.h.bf16 %v1514_v1  ;;  %v1515_v5 = vunpack.i.l.bf16 %v1514_v1 }
 0x34c   :  { %v1521_v6 = vunpack.i.h.bf16 %v1519_v58  ;;  %v1520_v7 = vunpack.i.l.bf16 %v1519_v58 }
 0x34d   :  { %v847_v8 = vsel %vm120_vm2, %v2008_v60, %v1515_v5  ;;  %v848_v10 = vsel %vm120_vm2, %v2014_v9, %v1516_v3 }
 0x34e   :  { %v1524_v62 = vpop.permute.xlu1 %1523  ;;  %v856_v11 = vpack.c.bf16 %v848_v10, %v847_v8  ;;  %v788_v14 = vsel %vm120_vm2, %v1516_v3, %v1521_v6  ;;  %v787_v19 = vsel %vm120_vm2, %v1515_v5, %v1520_v7 }
 0x34f   :  { %v1529_v29 = vpop.permute.xlu0 %1528  ;;  %v1526_v12 = vunpack.i.h.bf16 %v1524_v62  ;;  %v1525_v13 = vunpack.i.l.bf16 %v1524_v62 }
 0x350   :  { %v1531_v47 = vunpack.i.h.bf16 %v1529_v29  ;;  %v1530_v41 = vunpack.i.l.bf16 %v1529_v29  ;;  %1117 = vmatprep.mubr.bf16.mxu0 %v856_v11 }
 0x351   :  { %v835_v60 = vsel %vm170_vm3, %v1525_v13, %v1526_v12  ;;  %v851_v9 = vsel %vm170_vm3, %v787_v19, %v1525_v13  ;;  %1118 = vmatmul.mubr.bf16.vlgmr.msra.gmra.mrb[8].mxu0 %v855_v0 }
 0x352   :  { %v836_v20 = vsel %vm170_vm3, %v1530_v41, %v1531_v47  ;;  %v852_v15 = vsel %vm170_vm3, %v788_v14, %v1530_v41  ;;  %v1534_v23 = vpop.permute.xlu1 %1533 }
 0x353   :  { %v857_v16 = vpack.c.bf16 %v852_v15, %v851_v9  ;;  %v858_v18 = vpack.c.bf16 %v836_v20, %v835_v60  ;;  %v1539_v22 = vpop.permute.xlu0 %1538  ;;  %v1536_v24 = vunpack.i.h.bf16 %v1534_v23  ;;  %v1535_v25 = vunpack.i.l.bf16 %v1534_v23 }
 0x354   :  { %v1541_v26 = vunpack.i.h.bf16 %v1539_v22  ;;  %v1540_v21 = vunpack.i.l.bf16 %v1539_v22 }
 0x355   :  { %1391 = vmatprep.mubr.msk.bf16.mxu1 %vm415_vm4, %v858_v18  ;;  %v849_v27 = vsel %vm120_vm2, %v2029_v17, %v1535_v25  ;;  %v850_v30 = vsel %vm120_vm2, %v2035_v28, %v1536_v24 }
 0x356   :  { %1167 = vmatmul.mubr.bf16.vlgmr.msra.gmra.mrb[8].mxu1 %v857_v16  ;;  %v1544_v42 = vpop.permute.xlu1 %1543  ;;  %v860_v63 = vpack.c.bf16 %v850_v30, %v849_v27  ;;  %v790_v35 = vsel %vm120_vm2, %v1536_v24, %v1541_v26  ;;  %v789_v36 = vsel %vm120_vm2, %v1535_v25, %v1540_v21 }
 0x357   :  { %v1549_v31 = vpop.permute.xlu0 %1548  ;;  %v1546_v33 = vunpack.i.h.bf16 %v1544_v42  ;;  %v1545_v34 = vunpack.i.l.bf16 %v1544_v42 }
 0x358   :  { %v1551_v0 = vunpack.i.h.bf16 %v1549_v31  ;;  %v1550_v32 = vunpack.i.l.bf16 %v1549_v31  ;;  %1125 = vmatprep.mubr.bf16.mxu0 %v860_v63 }
 0x359   :  { %v837_v38 = vsel %vm170_vm3, %v1545_v34, %v1546_v33  ;;  %1126 = vmatmul.mubr.bf16.gmra.mrb[12].mxu0 %v859_v51  ;;  %v853_v17 = vsel %vm170_vm3, %v789_v36, %v1545_v34 }
 0x35a   :  { %v838_v37 = vsel %vm170_vm3, %v1550_v32, %v1551_v0  ;;  %v854_v28 = vsel %vm170_vm3, %v790_v35, %v1550_v32 }
 0x35b   :  { %v862_v39 = vpack.c.bf16 %v838_v37, %v837_v38  ;;  %v861_v40 = vpack.c.bf16 %v854_v28, %v853_v17 }
 0x35d   :  { %1392 = vmatprep.mubr.msk.bf16.mxu1 %vm415_vm4, %v862_v39 }
 0x35e   :  { %1175 = vmatmul.mubr.bf16.gmra.mrb[12].mxu1 %v861_v40 }
 0x424   :  { %v1437_v43 = vpop.f32.mrb[8].mxu0 }
 0x425   :  { %v1438_v44 = vpop.f32.mrb[9].mxu0 }
 0x426   :  { %v1439_v45 = vadd.f32 %v1438_v44, %v1437_v43  ;;  %v1440_v46 = vpop.f32.mrb[10].mxu0 }
 0x427   :  { %v1441_v49 = vpop.f32.mrb[11].mxu0 }
 0x428   :  { %v1442_v50 = vadd.f32 %v1441_v49, %v1440_v46 }
 0x429   :  { %v1168_v52 = vpop.f32.mrb[8].mxu1 }
 0x42a   :  { %v2089_v4 = vadd.f32 %v1439_v45, %v1168_v52  ;;  %v1170_v53 = vpop.f32.mrb[9].mxu1 }
 0x42b   :  { %v1171_v51 = vpop.f32.mrb[10].mxu1 }
 0x42c   :  { %v2091_v54 = vadd.f32 %v1442_v50, %v1171_v51  ;;  %v1173_v55 = vpop.f32.mrb[11].mxu1  ;;  %v1443_v56 = vpop.f32.mrb[12].mxu0  ;;  %v1194_v6 = vmul.f32 %v2089_v4, %v2089_v4 }
 0x42d   :  { %v1444_v57 = vpop.f32.mrb[13].mxu0 }
 0x42e   :  { %v1445_v59 = vadd.f32 %v1444_v57, %v1443_v56  ;;  %v1446_v61 = vpop.f32.mrb[14].mxu0  ;;  %v1195_v58 = vmul.f32 %v2091_v54, %v2091_v54  ;;  %v1185_v7 = vadd.f32 %v2091_v54, %v2089_v4 }
 0x42f   :  { %v1447_v1 = vpop.f32.mrb[15].mxu0 }
 0x430   :  { %v1448_v3 = vadd.f32 %v1447_v1, %v1446_v61  ;;  %v1198_v62 = vadd.f32 %v1195_v58, %v1194_v6 }
 0x431   :  { %v1176_v5 = vpop.f32.mrb[12].mxu1 }
 0x432   :  { %v2099_v8 = vadd.f32 %v1445_v59, %v1176_v5  ;;  %v1178_v10 = vpop.f32.mrb[13].mxu1 }
 0x433   :  { %v1179_v29 = vpop.f32.mrb[14].mxu1 }
 0x434   :  { %v1186_v11 = vadd.f32 %v1185_v7, %v2099_v8  ;;  %v1196_v47 = vmul.f32 %v2099_v8, %v2099_v8  ;;  %v2104_v41 = vadd.f32 %v1448_v3, %v1179_v29  ;;  %v1181_v12 = vpop.f32.mrb[15].mxu1 }
 0x436   :  { %v1199_v13 = vadd.f32 %v1198_v62, %v1196_v47  ;;  %v1187_v14 = vadd.f32 %v1186_v11, %v2104_v41  ;;  %v1197_v19 = vmul.f32 %v2104_v41, %v2104_v41  ;;  %v1183_v11 = vld [vmem:[%s2170_s6] sm:$0x1] }
 0x438   :  { %v1188_v20 = vrot.slane %v1187_v14, 4  ;;  %v1200_v15 = vadd.f32 %v1199_v13, %v1197_v19  ;;  %v1184_v13 = vld [vmem:[%s2171_s7] sm:$0x1] }
 0x43a   :  { %v1189_v60 = vadd.f32 %v1188_v20, %v1187_v14  ;;  %v1201_v9 = vrot.slane %v1200_v15, 4 }
 0x43c   :  { %v1190_v16 = vrot.slane %v1189_v60, 2  ;;  %v1202_v18 = vadd.f32 %v1201_v9, %v1200_v15 }
 0x43e   :  { %v1191_v22 = vadd.f32 %v1190_v16, %v1189_v60  ;;  %v1203_v23 = vrot.slane %v1202_v18, 2 }
 0x440   :  { %v1192_v24 = vrot.slane %v1191_v22, 1  ;;  %v1204_v25 = vadd.f32 %v1203_v23, %v1202_v18 }
 0x442   :  { %v1205_v26 = vrot.slane %v1204_v25, 1  ;;  %v1193_v21 = vadd.f32 %v1192_v24, %v1191_v22  ;;  %v1302_v22 = vld [vmem:[%s2165_s1 + $0x8] sm:$0xff] }
 0x444   :  { %v1206_v27 = vadd.f32 %v1205_v26, %v1204_v25 }
 0x446   :  { %v1207_v30 = vsel %vm544_vm5, %v1193_v21, %v1206_v27 }
 0x447   :  { %1211 = vrot.lane.b32.xlu0 %v1207_v30, %s1688_s10  ;;  %1208 = vrot.lane.b32.xlu1 %v1207_v30, %s1689_s0  ;;  %s1703_s10 = smov [#allocation8]  }
 0x44b   :  { %1217 = vrot.lane.b32.xlu0 %v1207_v30, %s1687_s9  ;;  %1214 = vrot.lane.b32.xlu1 %v1207_v30, %s1690_s11  ;;  %s1322_s11 = sshll.u32 %s1703_s10, 4  ;;  %s1323_s11 = int_to_ptr.vmem [resolvable:$true] %s1322_s11 }
 0x44c   :  { %p1659_p3 = scmp.lt.s32.totalorder %s1323_s11, %s1323_s11 }
 0x44f   :  { %1223 = vrot.lane.b32.xlu0 %v1207_v30, %s1691_s12  ;;  %1220 = vrot.lane.b32.xlu1 %v1207_v30, %s1692_s3 }
 0x453   :  { %1229 = vrot.lane.b32.xlu0 %v1207_v30, %s1683_s15  ;;  %1226 = vrot.lane.b32.xlu1 %v1207_v30, %s1693_s13 }
 0x457   :  { %1235 = vrot.lane.b32.xlu0 %v1207_v30, %s1694_s14  ;;  %1232 = vrot.lane.b32.xlu1 %v1207_v30, %s1695_s16 }
 0x45b   :  { %1241 = vrot.lane.b32.xlu0 %v1207_v30, %s1696_s17  ;;  %1238 = vrot.lane.b32.xlu1 %v1207_v30, %s1697_s18 }
 0x45f   :  { %1247 = vrot.lane.b32.xlu0 %v1207_v30, %s1698_s19  ;;  %1244 = vrot.lane.b32.xlu1 %v1207_v30, %s1699_s20 }
 0x463   :  { %1250 = vrot.lane.b32.xlu1 %v1207_v30, %s1700_s21 }
 0x4b9   :  { %v1212_v31 = vpop.permute.xlu0 %1211  ;;  %v1209_v42 = vpop.permute.xlu1 %1208 }
 0x4ba   :  { %v1210_v63 = vadd.f32 %v1209_v42, %v1207_v30 }
 0x4bc   :  { %v1213_v0 = vadd.f32 %v1212_v31, %v1210_v63 }
 0x4bd   :  { %v1218_v32 = vpop.permute.xlu0 %1217  ;;  %v1215_v33 = vpop.permute.xlu1 %1214 }
 0x4be   :  { %v1216_v34 = vadd.f32 %v1215_v33, %v1213_v0 }
 0x4c0   :  { %v1219_v35 = vadd.f32 %v1218_v32, %v1216_v34 }
 0x4c1   :  { %v1224_v36 = vpop.permute.xlu0 %1223  ;;  %v1221_v37 = vpop.permute.xlu1 %1220 }
 0x4c2   :  { %v1222_v38 = vadd.f32 %v1221_v37, %v1219_v35 }
 0x4c4   :  { %v1225_v17 = vadd.f32 %v1224_v36, %v1222_v38 }
 0x4c5   :  { %v1230_v28 = vpop.permute.xlu0 %1229  ;;  %v1227_v39 = vpop.permute.xlu1 %1226 }
 0x4c6   :  { %v1228_v40 = vadd.f32 %v1227_v39, %v1225_v17 }
 0x4c8   :  { %v1231_v43 = vadd.f32 %v1230_v28, %v1228_v40 }
 0x4c9   :  { %v1236_v44 = vpop.permute.xlu0 %1235  ;;  %v1233_v45 = vpop.permute.xlu1 %1232 }
 0x4ca   :  { %v1234_v46 = vadd.f32 %v1233_v45, %v1231_v43 }
 0x4cc   :  { %v1237_v49 = vadd.f32 %v1236_v44, %v1234_v46 }
 0x4cd   :  { %v1242_v50 = vpop.permute.xlu0 %1241  ;;  %v1239_v52 = vpop.permute.xlu1 %1238 }
 0x4ce   :  { %v1240_v53 = vadd.f32 %v1239_v52, %v1237_v49 }
 0x4d0   :  { %v1243_v51 = vadd.f32 %v1242_v50, %v1240_v53 }
 0x4d1   :  { %v1245_v55 = vpop.permute.xlu1 %1244  ;;  %v1248_v57 = vpop.permute.xlu0 %1247 }
 0x4d2   :  { %v1246_v56 = vadd.f32 %v1245_v55, %v1243_v51 }
 0x4d4   :  { %v1249_v59 = vadd.f32 %v1248_v57, %v1246_v56 }
 0x4d5   :  { %v1251_v61 = vpop.permute.xlu1 %1250 }
 0x4d6   :  { %v1252_v58 = vadd.f32 %v1251_v61, %v1249_v59 }
 0x4d8   :  { %v1253_v1 = vmul.f32 0.001953125, %v1252_v58 }
 0x4da   :  { %v1254_v3 = vmul.f32 %v1253_v1, %v1253_v1 }
 0x4dc   :  { %v1256_v5 = vrot.slane %v1254_v3, 7 }
 0x4de   :  { %v1258_v6 = vsub.f32 %v1253_v1, %v1256_v5 }
 0x4e0   :  { %v1259_v7 = vadd.f32 1e-05, %v1258_v6 }
 0x4e2   :  { %1608 = vrsqrt.f32 %v1259_v7 }
 0x4ec   :  { %v1609_v10 = vpop.eup %1608 }
 0x4ed   :  { %v1268_v29 = vrot.slane %v1609_v10, %v1954_v48 }
 0x4ef   :  { %v1269_v62 = vcombine.high %v1268_v29, %v1268_v29 }
 0x4f1   :  { %v1276_v47 = vrot.slane %v1269_v62, %v1954_v48  ;;  %v1301_v48 = vld [vmem:[%s2165_s1] sm:$0xff] }
 0x4f3   :  { %v1278_v12 = vmul.f32 %v1276_v47, %v1183_v11 }
 0x4f5   :  { %v1283_v14 = vrot.slane %v1278_v12, %v1960_v2  ;;  %v1289_v19 = vmul.f32 %v1278_v12, %v1253_v1 }
 0x4f7   :  { %v1290_v20 = vsub.f32 %v1184_v13, %v1289_v19  ;;  %v1285_v15 = vmul.f32 %v1283_v14, %v2089_v4  ;;  %v1286_v60 = vmul.f32 %v1283_v14, %v2091_v54  ;;  %v1287_v9 = vmul.f32 %v1283_v14, %v2099_v8  ;;  %v1303_v4 = vld [vmem:[%s2165_s1 + $0x10] sm:$0xff]  ;;  %v1304_v54 = vld [vmem:[%s2165_s1 + $0x18] sm:$0xff]  ;;  %s1654_s1 = scalar_lea.vmem %s1323_s11, 512 }
 0x4f8   :  { %v1288_v16 = vmul.f32 %v1283_v14, %v2104_v41  ;;  %p1655_p2 = scmp.ne.s32.totalorder %s1323_s11, %s1654_s1  ;;  %p1660_p4 = scmp.lt.s32.totalorder %s1654_s1, %s1654_s1 }
 0x4f9   :  { %v1295_v18 = vrot.slane %v1290_v20, %v1960_v2 }
 0x4fa   :  { %p1661_p5 = por %p1660_p4, %p1659_p3 }
 0x4fb   :  { %v1297_v8 = vadd.f32 %v1295_v18, %v1285_v15  ;;  %v1298_v41 = vadd.f32 %v1295_v18, %v1286_v60  ;;  %v1299_v23 = vadd.f32 %v1295_v18, %v1287_v9  ;;  %v1300_v2 = vadd.f32 %v1295_v18, %v1288_v16 }
 0x4fc   :  { %p1662_p6 = pnand %p1661_p5, %p1655_p2 }
 0x4fd   :  { %v1305_v24 = vadd.f32 %v1301_v48, %v1297_v8  ;;  %v1306_v25 = vadd.f32 %v1302_v22, %v1298_v41  ;;  %v1307_v26 = vadd.f32 %v1303_v4, %v1299_v23  ;;  %v1308_v21 = vadd.f32 %v1304_v54, %v1300_v2 }
 0x4ff   :  { %v1309_v27 = vmax.f32 %v1305_v24, 0.0  ;;  %v1310_v30 = vmax.f32 %v1306_v25, 0.0  ;;  %v1311_v31 = vmax.f32 %v1307_v26, 0.0  ;;  %v1312_v42 = vmax.f32 %v1308_v21, 0.0 }
 0x501   :  { %1313 = vst [vmem:[#allocation8] sm:$0xff] %v1309_v27  ;;  %1314 = vst [vmem:[#allocation8 + $0x8] sm:$0xff] %v1310_v30 }
 0x502   :  { %1315 = vst [vmem:[#allocation8 + $0x10] sm:$0xff] %v1311_v31  ;;  %1316 = vst [vmem:[#allocation8 + $0x18] sm:$0xff] %v1312_v42 }
 0x503   :  { %1665 = shalt.err (!%p1662_p6)
}
 0x504   :  { %s1666_s13 = scalar_lea.hbm %s2172_s8, 512 }
 0x505   :  { %p1667_p7 = scmp.ne.s32.totalorder %s2172_s8, %s1666_s13  ;;  %p1670_p8 = scmp.lt.u32.totalorder %s1666_s13, %s2172_s8 }
 0x507   :  { %p1672_p9 = pnand %p1670_p8, %p1667_p7 }
 0x509   :  { %1675 = shalt.err (!%p1672_p9)
}
 0x50a   :  { %s1704_s19 = smov 128  }
 0x50b   :  { %1328 = dma.vmem_to_hbm [thread:$0]  %s1323_s11, 512, %s2172_s8, [#allocation5], %s1704_s19, %s1704_s19, %s1689_s0  }
 0x50c   :  { %1680 = dma.done.wait [#allocation5], 512  }
 0x50d   :  { %1681 = vsyncadd [#allocation5], 4294966784 }
 0x50e   :  { %1332 = vsyncpa [#allocation4], 1 }
 0x50f   :  { %1333 = vsyncpa [#allocation7], 1 }
 0x510   :  { %1334 = vsyncpa [#allocation5], 1 }

</bundles_post_ra>
